<compile_context>
chip_gen: v7x
topology: tpu7x:2x2x1
jax: 0.10.0
libtpu: 0.0.40
codegen_flags: <defaults>
</compile_context>

<pallas_src>
import functools
import math

import jax
import jax.numpy as jnp
import numpy as np
from jax.experimental import pallas as pl
from jax.experimental.pallas import tpu as pltpu

# ----------------------------- configuration --------------------------------
EMB_MONTH = 8
EMB_WEEKDAY = 4
NUM_FEATURES = 6                 # module default
LSTM_HIDDEN = 32                 # kept small for the example
NUM_LAYERS = 2
N_HEADS = 4
LN_DIM = NUM_FEATURES + 11       # 17
X_DIM = LN_DIM - 16              # 1 (see NOTE above)
B = 2
S = 8

_VMEM = pl.BlockSpec(memory_space=pltpu.MemorySpace.VMEM)


# ----------------------------- fused Pallas kernel ---------------------------
def fused_kernel(xin_ref, ln_ref, wih0_ref, wrec_ref, wqkv_ref, wo_ref,
                 bias_ref, o_ref, *, batch, seq_len, hidden, num_heads):
    """Fused LayerNorm -> pipelined 2-layer LSTM -> batched MHA -> mean.

    xin:   (B*S, 17) batch-major rows (row = b*S + t).
    ln:    (2, 17)        row0 = gamma, row1 = beta.
    wih0:  (17, 4H)       layer-1 input projection (pre-transposed).
    wrec:  (2H, 8H)       block weight: [:H,:4H]=Whh0^T, [:H,4H:]=Wih1^T,
                          [H:,4H:]=Whh1^T, [H:,:4H]=0.
    wqkv:  (E, 3E)        fused q|k|v projection.
    wo:    (E, E)         attention output projection.
    bias:  (3, 4H)        row0 = b0 (bih0+bhh0), row1 = b1 (bih1+bhh1),
                          row2 = [b_q|b_k|b_v | b_o]  (3E + E = 4H lanes).
    out:   (B, E)         mean-pooled attention output per batch.
    """
    f32 = jnp.float32
    H = hidden
    E = H
    R = seq_len * batch

    # Hoist all parameter loads out of the unrolled loops.
    wih0 = wih0_ref[...]
    wrec = wrec_ref[...]
    wqkv = wqkv_ref[...]
    wo = wo_ref[...]
    ln_g = ln_ref[0:1, :]
    ln_b = ln_ref[1:2, :]
    b0 = bias_ref[0:1, :]
    b1 = bias_ref[1:2, :]
    b_qkv = bias_ref[2:3, 0:3 * E]
    b_o = bias_ref[2:3, 3 * E:4 * E]

    # ---------------- LayerNorm over the feature (lane) dim -----------------
    x = xin_ref[...].astype(f32)                                  # (B*S, 17)
    mu = jnp.mean(x, axis=-1, keepdims=True)
    xc = x - mu
    var = jnp.mean(xc * xc, axis=-1, keepdims=True)
    xn = xc * jax.lax.rsqrt(var + 1e-5) * ln_g + ln_b

    # ---------------- hoisted layer-1 input projection (a VALUE) ------------
    xg = jnp.dot(xn, wih0, preferred_element_type=f32) + b0       # (B*S, 4H)
    # Regroup batch-major rows into per-timestep (B, 4H) blocks (off the
    # recurrence critical path; depends only on the input).
    xg_steps = [
        jnp.concatenate(
            [xg[b * seq_len + t:b * seq_len + t + 1, :] for b in range(batch)],
            axis=0)
        for t in range(seq_len)
    ]

    def cell(gates, c_prev):
        # Full-vreg EUP activations, then static lane slices (gate order i,f,g,o).
        sg = jax.nn.sigmoid(gates)
        th = jnp.tanh(gates)
        i_g = sg[:, 0 * H:1 * H]
        f_g = sg[:, 1 * H:2 * H]
        g_g = th[:, 2 * H:3 * H]
        o_g = sg[:, 3 * H:4 * H]
        c_new = f_g * c_prev + i_g * g_g
        h_new = o_g * jnp.tanh(c_new)
        return h_new, c_new

    # ---------------- software-pipelined 2-layer LSTM -----------------------
    # Iteration u: layer-1 does step u (if u < S), layer-2 does step u-1.
    # Both share the LHS [h1_{u-1} | h2_{u-2}] so the recurrent matmuls fuse
    # into one block-diagonal MXU push.
    h1 = jnp.zeros((batch, H), f32)
    c1 = jnp.zeros((batch, H), f32)
    h2 = jnp.zeros((batch, H), f32)
    c2 = jnp.zeros((batch, H), f32)
    h2_rows = []

    # u = 0: layer-1 only; the recurrent term is zero and b0 lives in xg.
    h1, c1 = cell(xg_steps[0], c1)

    for u in range(1, seq_len + 1):                # static -> fully unrolled
        lhs = jnp.concatenate([h1, h2], axis=-1)                  # (B, 2H)
        gates_all = jnp.dot(lhs, wrec, preferred_element_type=f32)  # (B, 8H)
        g2 = gates_all[:, 4 * H:] + b1             # layer-2 gates, time u-1
        if u < seq_len:
            g1 = gates_all[:, :4 * H] + xg_steps[u]  # layer-1 gates, time u
        h2, c2 = cell(g2, c2)
        h2_rows.append(h2)
        if u < seq_len:
            h1, c1 = cell(g1, c1)
    # TODO(synk): inter-layer / output dropout (p=0.2) is identity (eval mode).

    hseq = jnp.concatenate(h2_rows, axis=0)        # (S*B, H), time-major rows

    # ---------------- batched multi-head self-attention + mean --------------
    qkv = jnp.dot(hseq, wqkv, preferred_element_type=f32) + b_qkv   # (R, 3E)
    q = qkv[:, 0 * E:1 * E]
    k = qkv[:, 1 * E:2 * E]
    v = qkv[:, 2 * E:3 * E]

    # Rows are time-major (r = t*B + b) -> batch id of row r is r % B.
    ri = jax.lax.broadcasted_iota(jnp.int32, (R, R), 0)
    ci = jax.lax.broadcasted_iota(jnp.int32, (R, R), 1)
    same_batch = (ri % batch) == (ci % batch)

    head_dim = E // num_heads
    scale = 1.0 / math.sqrt(head_dim)

    head_outs = []
    for hh in range(num_heads):
        lo = hh * head_dim
        qh = q[:, lo:lo + head_dim] * scale
        kh = k[:, lo:lo + head_dim]
        vh = v[:, lo:lo + head_dim]
        s = jax.lax.dot_general(qh, kh, (((1,), (1,)), ((), ())),
                                preferred_element_type=f32)         # (R, R)
        s = jnp.where(same_batch, s, jnp.float32(-1e30))
        s = s - jnp.max(s, axis=-1, keepdims=True)
        e = jnp.exp(s)
        p = e * pl.reciprocal(jnp.sum(e, axis=-1, keepdims=True), approx=True)
        head_outs.append(jnp.dot(p, vh, preferred_element_type=f32))
    attn = jnp.concatenate(head_outs, axis=-1)                      # (R, E)
    out_rows = jnp.dot(attn, wo, preferred_element_type=f32) + b_o  # (R, E)

    # Segmented mean over time: rows [t*B:(t+1)*B] are (batch0, batch1) at t.
    acc = jnp.zeros((batch, E), f32)
    for t in range(seq_len):
        acc = acc + out_rows[t * batch:(t + 1) * batch, :]
    o_ref[...] = acc * (1.0 / seq_len)


# ----------------------------- Pallas wrapper --------------------------------
def fused_forward_pallas(prep, combined_bm, batch, seq_len):
    kernel = functools.partial(fused_kernel, batch=batch, seq_len=seq_len,
                               hidden=LSTM_HIDDEN, num_heads=N_HEADS)
    # TODO(synk): for large batch on v7x, add a grid over batch with
    # dimension_semantics=("parallel",) to use both TensorCores.
    return pl.pallas_call(
        kernel,
        out_shape=jax.ShapeDtypeStruct((batch, LSTM_HIDDEN), jnp.float32),
        in_specs=[_VMEM] * 7,
        out_specs=_VMEM,
    )(combined_bm, prep["ln"], prep["wih0"], prep["w_rec"],
      prep["w_qkv"], prep["wo"], prep["biases"])


# ----------------------------- plain-JAX glue --------------------------------
def embedding_datetime(time, emb_month, emb_weekday):
    month = time[:, :, 0].astype(jnp.int32) - 1
    day = time[:, :, 1:2]
    hour = time[:, :, 2:3]
    minute = time[:, :, 3:4]
    weekday = time[:, :, 4].astype(jnp.int32)
    two_pi = 2.0 * math.pi
    return jnp.concatenate(
        [emb_month[month], emb_weekday[weekday],
         jnp.sin(day * (two_pi / 31)), jnp.cos(day * (two_pi / 31)),
         jnp.sin(hour * (two_pi / 24)), jnp.cos(hour * (two_pi / 24)),
         jnp.sin(minute * (two_pi / 60)), jnp.cos(minute * (two_pi / 60))],
        axis=-1)


@jax.jit
def ltsm_time_frame_forward(prep, x, time):
    # datetime embedding + time_linear + exact (erf) GELU: tiny feature glue
    # (gathers, sin/cos, erf) kept in plain JAX so XLA fuses it.
    tf = embedding_datetime(time, prep["emb_month"], prep["emb_weekday"])
    tf = jax.nn.gelu(tf @ prep["time_w_t"] + prep["time_b"], approximate=False)

    combined = jnp.concatenate([x, tf], axis=-1)                  # (B, S, 17)
    b_, s_, d = combined.shape
    combined_bm = combined.reshape(b_ * s_, d)    # free reshape, no transpose
    return fused_forward_pallas(prep, combined_bm, b_, s_)        # (B, H)


# ----------------------------- parameter prep --------------------------------
def prepare_params(params):
    """Pre-transpose / pre-pack weights once (outside the per-call path)."""
    H = LSTM_HIDDEN
    E = H
    f32 = jnp.float32
    (wih0, whh0, bih0, bhh0), (wih1, whh1, bih1, bhh1) = params["lstm"]

    # Block weight for the fused per-step recurrent matmul.
    w_rec = jnp.zeros((2 * H, 8 * H), f32)
    w_rec = w_rec.at[:H, :4 * H].set(whh0.T)       # layer-1 recurrent
    w_rec = w_rec.at[:H, 4 * H:].set(wih1.T)       # layer-2 input (from h1)
    w_rec = w_rec.at[H:, 4 * H:].set(whh1.T)       # layer-2 recurrent

    assert 4 * H == 3 * E + E                      # bias packing assumes E == H
    biases = jnp.stack([
        bih0 + bhh0,                                               # (4H,)
        bih1 + bhh1,                                               # (4H,)
        jnp.concatenate([params["in_proj_b"], params["out_proj_b"]]),
    ]).astype(f32)                                                 # (3, 4H)

    return {
        "emb_month": params["emb_month"],
        "emb_weekday": params["emb_weekday"],
        "time_w_t": params["time_w"].T,
        "time_b": params["time_b"],
        "ln": jnp.stack([params["ln_g"], params["ln_b"]]),         # (2, 17)
        "wih0": wih0.T,                                            # (17, 4H)
        "w_rec": w_rec,                                            # (2H, 8H)
        "w_qkv": params["in_proj_w"].T,                            # (E, 3E)
        "wo": params["out_proj_w"].T,                              # (E, E)
        "biases": biases,                                          # (3, 4H)
    }


# ----------------------------- reference (pure JAX) ---------------------------
def reference_forward(params, x, time):
    tf = embedding_datetime(time, params["emb_month"], params["emb_weekday"])
    tf = jax.nn.gelu(tf @ params["time_w"].T + params["time_b"], approximate=False)
    combined = jnp.concatenate([x, tf], axis=-1)
    mu = combined.mean(-1, keepdims=True)
    var = ((combined - mu) ** 2).mean(-1, keepdims=True)
    combined = (combined - mu) * jax.lax.rsqrt(var + 1e-5) * params["ln_g"] + params["ln_b"]

    h_seq = combined
    H = LSTM_HIDDEN
    for (wih, whh, bih, bhh) in params["lstm"]:
        def step(carry, x_t, wih=wih, whh=whh, bih=bih, bhh=bhh):
            h, c = carry
            gates = x_t @ wih.T + bih + h @ whh.T + bhh
            i_g = jax.nn.sigmoid(gates[:, :H])
            f_g = jax.nn.sigmoid(gates[:, H:2 * H])
            g_g = jnp.tanh(gates[:, 2 * H:3 * H])
            o_g = jax.nn.sigmoid(gates[:, 3 * H:])
            c = f_g * c + i_g * g_g
            h = o_g * jnp.tanh(c)
            return (h, c), h
        xs = jnp.transpose(h_seq, (1, 0, 2))
        zeros = jnp.zeros((x.shape[0], H), jnp.float32)
        _, ys = jax.lax.scan(step, (zeros, zeros), xs)
        h_seq = jnp.transpose(ys, (1, 0, 2))

    E = H
    q = h_seq @ params["in_proj_w"][:E].T + params["in_proj_b"][:E]
    k = h_seq @ params["in_proj_w"][E:2 * E].T + params["in_proj_b"][E:2 * E]
    v = h_seq @ params["in_proj_w"][2 * E:].T + params["in_proj_b"][2 * E:]
    hd = E // N_HEADS

    def split(t):
        bb, ss, _ = t.shape
        return t.reshape(bb, ss, N_HEADS, hd).transpose(0, 2, 1, 3)

    qh, kh, vh = split(q), split(k), split(v)
    s = jnp.einsum("bhqd,bhkd->bhqk", qh * (1.0 / math.sqrt(hd)), kh)
    p = jax.nn.softmax(s, axis=-1)
    o = jnp.einsum("bhqk,bhkd->bhqd", p, vh).transpose(0, 2, 1, 3).reshape(h_seq.shape)
    o = o @ params["out_proj_w"].T + params["out_proj_b"]
    return o.mean(axis=1)


# ----------------------------- parameter init --------------------------------
def init_params(key):
    ks = jax.random.split(key, 16)

    def u(k, shape, scale):
        return jax.random.uniform(k, shape, jnp.float32, -scale, scale)

    p = {}
    p["emb_month"] = jax.random.normal(ks[0], (12, EMB_MONTH), jnp.float32)
    p["emb_weekday"] = jax.random.normal(ks[1], (8, EMB_WEEKDAY), jnp.float32)

    d_in = EMB_MONTH + EMB_WEEKDAY + 6
    st = 1.0 / math.sqrt(d_in)
    p["time_w"] = u(ks[2], (16, d_in), st)
    p["time_b"] = u(ks[3], (16,), st)

    p["ln_g"] = jnp.ones((LN_DIM,), jnp.float32)
    p["ln_b"] = jnp.zeros((LN_DIM,), jnp.float32)

    H = LSTM_HIDDEN
    sh = 1.0 / math.sqrt(H)
    in_dims = [LN_DIM] + [H] * (NUM_LAYERS - 1)
    lstm = []
    idx = 4
    for l in range(NUM_LAYERS):
        wih = u(ks[idx + 0], (4 * H, in_dims[l]), sh)
        whh = u(ks[idx + 1], (4 * H, H), sh)
        bih = u(ks[idx + 2], (4 * H,), sh)
        bhh = u(ks[idx + 3], (4 * H,), sh)
        idx += 4
        lstm.append((wih, whh, bih, bhh))
    p["lstm"] = lstm

    E = H
    sa = 1.0 / math.sqrt(E)
    p["in_proj_w"] = u(ks[idx + 0], (3 * E, E), sa)
    p["in_proj_b"] = u(ks[idx + 1], (3 * E,), sa)
    p["out_proj_w"] = u(ks[idx + 2], (E, E), sa)
    p["out_proj_b"] = u(ks[idx + 3], (E,), sa)
    return p


# ----------------------------------- main ------------------------------------
if __name__ == "__main__":
    key = jax.random.PRNGKey(0)
    pkey, xkey, tkey = jax.random.split(key, 3)
    params = init_params(pkey)
    prep = prepare_params(params)

    x = jax.random.normal(xkey, (B, S, X_DIM), jnp.float32)

    tks = jax.random.split(tkey, 5)
    month = jax.random.randint(tks[0], (B, S, 1), 1, 13)
    day = jax.random.randint(tks[1], (B, S, 1), 1, 32)
    hour = jax.random.randint(tks[2], (B, S, 1), 0, 24)
    minute = jax.random.randint(tks[3], (B, S, 1), 0, 60)
    weekday = jax.random.randint(tks[4], (B, S, 1), 0, 7)
    time = jnp.concatenate([month, day, hour, minute, weekday],
                           axis=-1).astype(jnp.float32)

    out = ltsm_time_frame_forward(prep, x, time)
    out = jax.block_until_ready(out)

    ref = reference_forward(params, x, time)
    np.testing.assert_allclose(np.asarray(out), np.asarray(ref),
                               rtol=2e-2, atol=2e-2)
    assert out.shape == (B, LSTM_HIDDEN)
    print("KERNEL_OK")
</pallas_src>

<mosaic_0001>
module attributes {stable_mosaic.version = 11 : i64} {
  func.func @fused_kernel(%arg0: memref<16x17xf32, #tpu.memory_space<vmem>>, %arg1: memref<2x17xf32, #tpu.memory_space<vmem>>, %arg2: memref<17x128xf32, #tpu.memory_space<vmem>>, %arg3: memref<64x256xf32, #tpu.memory_space<vmem>>, %arg4: memref<32x96xf32, #tpu.memory_space<vmem>>, %arg5: memref<32x32xf32, #tpu.memory_space<vmem>>, %arg6: memref<3x128xf32, #tpu.memory_space<vmem>>, %arg7: memref<2x32xf32, #tpu.memory_space<vmem>>) attributes {dimension_semantics = [], scalar_prefetch = 0 : i64, scratch_operands = 0 : i64, tpu.core_type = #tpu.core_type<tc>} {
    %c0 = arith.constant 0 : index
    %c0_0 = arith.constant 0 : index
    %0 = vector.load %arg2[%c0, %c0_0] : memref<17x128xf32, #tpu.memory_space<vmem>>, vector<17x128xf32>
    %c0_1 = arith.constant 0 : index
    %c0_2 = arith.constant 0 : index
    %1 = vector.load %arg3[%c0_1, %c0_2] : memref<64x256xf32, #tpu.memory_space<vmem>>, vector<64x256xf32>
    %c0_3 = arith.constant 0 : index
    %c0_4 = arith.constant 0 : index
    %2 = vector.load %arg4[%c0_3, %c0_4] : memref<32x96xf32, #tpu.memory_space<vmem>>, vector<32x96xf32>
    %c0_5 = arith.constant 0 : index
    %c0_6 = arith.constant 0 : index
    %3 = vector.load %arg5[%c0_5, %c0_6] : memref<32x32xf32, #tpu.memory_space<vmem>>, vector<32x32xf32>
    %c0_7 = arith.constant 0 : index
    %c0_8 = arith.constant 0 : index
    %4 = vector.load %arg1[%c0_7, %c0_8] : memref<2x17xf32, #tpu.memory_space<vmem>>, vector<1x17xf32>
    %c1 = arith.constant 1 : index
    %c0_9 = arith.constant 0 : index
    %5 = vector.load %arg1[%c1, %c0_9] : memref<2x17xf32, #tpu.memory_space<vmem>>, vector<1x17xf32>
    %c0_10 = arith.constant 0 : index
    %c0_11 = arith.constant 0 : index
    %6 = vector.load %arg6[%c0_10, %c0_11] : memref<3x128xf32, #tpu.memory_space<vmem>>, vector<1x128xf32>
    %c1_12 = arith.constant 1 : index
    %c0_13 = arith.constant 0 : index
    %7 = vector.load %arg6[%c1_12, %c0_13] : memref<3x128xf32, #tpu.memory_space<vmem>>, vector<1x128xf32>
    %c2 = arith.constant 2 : index
    %c0_14 = arith.constant 0 : index
    %8 = vector.load %arg6[%c2, %c0_14] : memref<3x128xf32, #tpu.memory_space<vmem>>, vector<1x96xf32>
    %c2_15 = arith.constant 2 : index
    %c96 = arith.constant 96 : index
    %9 = vector.load %arg6[%c2_15, %c96] : memref<3x128xf32, #tpu.memory_space<vmem>>, vector<1x32xf32>
    %c0_16 = arith.constant 0 : index
    %c0_17 = arith.constant 0 : index
    %10 = vector.load %arg0[%c0_16, %c0_17] : memref<16x17xf32, #tpu.memory_space<vmem>>, vector<16x17xf32>
    %cst = arith.constant dense<0.000000e+00> : vector<16xf32>
    %11 = vector.multi_reduction <add>, %10, %cst [1] : vector<16x17xf32> to vector<16xf32>
    %12 = vector.shape_cast %11 : vector<16xf32> to vector<16x1xf32>
    %cst_18 = arith.constant 1.700000e+01 : f32
    %13 = vector.broadcast %cst_18 : f32 to vector<16x1xf32>
    %14 = arith.divf %12, %13 : vector<16x1xf32>
    %15 = vector.broadcast %14 : vector<16x1xf32> to vector<16x17xf32>
    %16 = arith.subf %10, %15 : vector<16x17xf32>
    %17 = arith.mulf %16, %16 : vector<16x17xf32>
    %cst_19 = arith.constant dense<0.000000e+00> : vector<16xf32>
    %18 = vector.multi_reduction <add>, %17, %cst_19 [1] : vector<16x17xf32> to vector<16xf32>
    %19 = vector.shape_cast %18 : vector<16xf32> to vector<16x1xf32>
    %cst_20 = arith.constant 1.700000e+01 : f32
    %20 = vector.broadcast %cst_20 : f32 to vector<16x1xf32>
    %21 = arith.divf %19, %20 : vector<16x1xf32>
    %cst_21 = arith.constant 9.99999974E-6 : f32
    %22 = vector.broadcast %cst_21 : f32 to vector<16x1xf32>
    %23 = arith.addf %21, %22 : vector<16x1xf32>
    %24 = math.rsqrt %23 : vector<16x1xf32>
    %25 = vector.broadcast %24 : vector<16x1xf32> to vector<16x17xf32>
    %26 = arith.mulf %16, %25 : vector<16x17xf32>
    %27 = vector.broadcast %4 : vector<1x17xf32> to vector<16x17xf32>
    %28 = arith.mulf %26, %27 : vector<16x17xf32>
    %29 = vector.broadcast %5 : vector<1x17xf32> to vector<16x17xf32>
    %30 = arith.addf %28, %29 : vector<16x17xf32>
    %cst_22 = arith.constant dense<0.000000e+00> : vector<16x128xf32>
    %31 = tpu.matmul %30, %0, %cst_22 {dimension_numbers = #tpu.dot_dimension_numbers<[1], [0], [0], [1], [0, 0, 1, 1], [], []>} : vector<16x17xf32>, vector<17x128xf32>, vector<16x128xf32> -> vector<16x128xf32>
    %32 = vector.broadcast %6 : vector<1x128xf32> to vector<16x128xf32>
    %33 = arith.addf %31, %32 : vector<16x128xf32>
    %34 = vector.extract_strided_slice %33 {offsets = [0, 0], sizes = [1, 128], strides = [1, 1]} : vector<16x128xf32> to vector<1x128xf32>
    %35 = vector.extract_strided_slice %33 {offsets = [8, 0], sizes = [1, 128], strides = [1, 1]} : vector<16x128xf32> to vector<1x128xf32>
    %36 = tpu.concatenate %34, %35 in 0 : vector<1x128xf32>, vector<1x128xf32> -> vector<2x128xf32>
    %37 = vector.extract_strided_slice %33 {offsets = [1, 0], sizes = [1, 128], strides = [1, 1]} : vector<16x128xf32> to vector<1x128xf32>
    %38 = vector.extract_strided_slice %33 {offsets = [9, 0], sizes = [1, 128], strides = [1, 1]} : vector<16x128xf32> to vector<1x128xf32>
    %39 = tpu.concatenate %37, %38 in 0 : vector<1x128xf32>, vector<1x128xf32> -> vector<2x128xf32>
    %40 = vector.extract_strided_slice %33 {offsets = [2, 0], sizes = [1, 128], strides = [1, 1]} : vector<16x128xf32> to vector<1x128xf32>
    %41 = vector.extract_strided_slice %33 {offsets = [10, 0], sizes = [1, 128], strides = [1, 1]} : vector<16x128xf32> to vector<1x128xf32>
    %42 = tpu.concatenate %40, %41 in 0 : vector<1x128xf32>, vector<1x128xf32> -> vector<2x128xf32>
    %43 = vector.extract_strided_slice %33 {offsets = [3, 0], sizes = [1, 128], strides = [1, 1]} : vector<16x128xf32> to vector<1x128xf32>
    %44 = vector.extract_strided_slice %33 {offsets = [11, 0], sizes = [1, 128], strides = [1, 1]} : vector<16x128xf32> to vector<1x128xf32>
    %45 = tpu.concatenate %43, %44 in 0 : vector<1x128xf32>, vector<1x128xf32> -> vector<2x128xf32>
    %46 = vector.extract_strided_slice %33 {offsets = [4, 0], sizes = [1, 128], strides = [1, 1]} : vector<16x128xf32> to vector<1x128xf32>
    %47 = vector.extract_strided_slice %33 {offsets = [12, 0], sizes = [1, 128], strides = [1, 1]} : vector<16x128xf32> to vector<1x128xf32>
    %48 = tpu.concatenate %46, %47 in 0 : vector<1x128xf32>, vector<1x128xf32> -> vector<2x128xf32>
    %49 = vector.extract_strided_slice %33 {offsets = [5, 0], sizes = [1, 128], strides = [1, 1]} : vector<16x128xf32> to vector<1x128xf32>
    %50 = vector.extract_strided_slice %33 {offsets = [13, 0], sizes = [1, 128], strides = [1, 1]} : vector<16x128xf32> to vector<1x128xf32>
    %51 = tpu.concatenate %49, %50 in 0 : vector<1x128xf32>, vector<1x128xf32> -> vector<2x128xf32>
    %52 = vector.extract_strided_slice %33 {offsets = [6, 0], sizes = [1, 128], strides = [1, 1]} : vector<16x128xf32> to vector<1x128xf32>
    %53 = vector.extract_strided_slice %33 {offsets = [14, 0], sizes = [1, 128], strides = [1, 1]} : vector<16x128xf32> to vector<1x128xf32>
    %54 = tpu.concatenate %52, %53 in 0 : vector<1x128xf32>, vector<1x128xf32> -> vector<2x128xf32>
    %55 = vector.extract_strided_slice %33 {offsets = [7, 0], sizes = [1, 128], strides = [1, 1]} : vector<16x128xf32> to vector<1x128xf32>
    %56 = vector.extract_strided_slice %33 {offsets = [15, 0], sizes = [1, 128], strides = [1, 1]} : vector<16x128xf32> to vector<1x128xf32>
    %57 = tpu.concatenate %55, %56 in 0 : vector<1x128xf32>, vector<1x128xf32> -> vector<2x128xf32>
    %cst_23 = arith.constant 0.000000e+00 : f32
    %58 = vector.broadcast %cst_23 : f32 to vector<2x32xf32>
    %cst_24 = arith.constant 0.000000e+00 : f32
    %59 = vector.broadcast %cst_24 : f32 to vector<2x32xf32>
    %cst_25 = arith.constant 0.000000e+00 : f32
    %60 = vector.broadcast %cst_25 : f32 to vector<2x32xf32>
    %61 = arith.negf %36 : vector<2x128xf32>
    %62 = math.exp %61 : vector<2x128xf32>
    %cst_26 = arith.constant 1.000000e+00 : f32
    %63 = vector.broadcast %cst_26 : f32 to vector<2x128xf32>
    %64 = arith.addf %63, %62 : vector<2x128xf32>
    %65 = arith.divf %63, %64 : vector<2x128xf32>
    %66 = math.tanh %36 : vector<2x128xf32>
    %67 = vector.extract_strided_slice %65 {offsets = [0, 0], sizes = [2, 32], strides = [1, 1]} : vector<2x128xf32> to vector<2x32xf32>
    %68 = vector.extract_strided_slice %65 {offsets = [0, 32], sizes = [2, 32], strides = [1, 1]} : vector<2x128xf32> to vector<2x32xf32>
    %69 = vector.extract_strided_slice %66 {offsets = [0, 64], sizes = [2, 32], strides = [1, 1]} : vector<2x128xf32> to vector<2x32xf32>
    %70 = vector.extract_strided_slice %65 {offsets = [0, 96], sizes = [2, 32], strides = [1, 1]} : vector<2x128xf32> to vector<2x32xf32>
    %71 = arith.mulf %68, %58 : vector<2x32xf32>
    %72 = arith.mulf %67, %69 : vector<2x32xf32>
    %73 = arith.addf %71, %72 : vector<2x32xf32>
    %74 = math.tanh %73 : vector<2x32xf32>
    %75 = arith.mulf %70, %74 : vector<2x32xf32>
    %76 = tpu.concatenate %75, %59 in 1 : vector<2x32xf32>, vector<2x32xf32> -> vector<2x64xf32>
    %cst_27 = arith.constant dense<0.000000e+00> : vector<2x256xf32>
    %77 = tpu.matmul %76, %1, %cst_27 {dimension_numbers = #tpu.dot_dimension_numbers<[1], [0], [0], [1], [0, 0, 1, 1], [], []>} : vector<2x64xf32>, vector<64x256xf32>, vector<2x256xf32> -> vector<2x256xf32>
    %78 = vector.extract_strided_slice %77 {offsets = [0, 128], sizes = [2, 128], strides = [1, 1]} : vector<2x256xf32> to vector<2x128xf32>
    %79 = vector.broadcast %7 : vector<1x128xf32> to vector<2x128xf32>
    %80 = arith.addf %78, %79 : vector<2x128xf32>
    %81 = vector.extract_strided_slice %77 {offsets = [0, 0], sizes = [2, 128], strides = [1, 1]} : vector<2x256xf32> to vector<2x128xf32>
    %82 = arith.addf %81, %39 : vector<2x128xf32>
    %83 = arith.negf %80 : vector<2x128xf32>
    %84 = math.exp %83 : vector<2x128xf32>
    %cst_28 = arith.constant 1.000000e+00 : f32
    %85 = vector.broadcast %cst_28 : f32 to vector<2x128xf32>
    %86 = arith.addf %85, %84 : vector<2x128xf32>
    %87 = arith.divf %85, %86 : vector<2x128xf32>
    %88 = math.tanh %80 : vector<2x128xf32>
    %89 = vector.extract_strided_slice %87 {offsets = [0, 0], sizes = [2, 32], strides = [1, 1]} : vector<2x128xf32> to vector<2x32xf32>
    %90 = vector.extract_strided_slice %87 {offsets = [0, 32], sizes = [2, 32], strides = [1, 1]} : vector<2x128xf32> to vector<2x32xf32>
    %91 = vector.extract_strided_slice %88 {offsets = [0, 64], sizes = [2, 32], strides = [1, 1]} : vector<2x128xf32> to vector<2x32xf32>
    %92 = vector.extract_strided_slice %87 {offsets = [0, 96], sizes = [2, 32], strides = [1, 1]} : vector<2x128xf32> to vector<2x32xf32>
    %93 = arith.mulf %90, %60 : vector<2x32xf32>
    %94 = arith.mulf %89, %91 : vector<2x32xf32>
    %95 = arith.addf %93, %94 : vector<2x32xf32>
    %96 = math.tanh %95 : vector<2x32xf32>
    %97 = arith.mulf %92, %96 : vector<2x32xf32>
    %98 = arith.negf %82 : vector<2x128xf32>
    %99 = math.exp %98 : vector<2x128xf32>
    %cst_29 = arith.constant 1.000000e+00 : f32
    %100 = vector.broadcast %cst_29 : f32 to vector<2x128xf32>
    %101 = arith.addf %100, %99 : vector<2x128xf32>
    %102 = arith.divf %100, %101 : vector<2x128xf32>
    %103 = math.tanh %82 : vector<2x128xf32>
    %104 = vector.extract_strided_slice %102 {offsets = [0, 0], sizes = [2, 32], strides = [1, 1]} : vector<2x128xf32> to vector<2x32xf32>
    %105 = vector.extract_strided_slice %102 {offsets = [0, 32], sizes = [2, 32], strides = [1, 1]} : vector<2x128xf32> to vector<2x32xf32>
    %106 = vector.extract_strided_slice %103 {offsets = [0, 64], sizes = [2, 32], strides = [1, 1]} : vector<2x128xf32> to vector<2x32xf32>
    %107 = vector.extract_strided_slice %102 {offsets = [0, 96], sizes = [2, 32], strides = [1, 1]} : vector<2x128xf32> to vector<2x32xf32>
    %108 = arith.mulf %105, %73 : vector<2x32xf32>
    %109 = arith.mulf %104, %106 : vector<2x32xf32>
    %110 = arith.addf %108, %109 : vector<2x32xf32>
    %111 = math.tanh %110 : vector<2x32xf32>
    %112 = arith.mulf %107, %111 : vector<2x32xf32>
    %113 = tpu.concatenate %112, %97 in 1 : vector<2x32xf32>, vector<2x32xf32> -> vector<2x64xf32>
    %cst_30 = arith.constant dense<0.000000e+00> : vector<2x256xf32>
    %114 = tpu.matmul %113, %1, %cst_30 {dimension_numbers = #tpu.dot_dimension_numbers<[1], [0], [0], [1], [0, 0, 1, 1], [], []>} : vector<2x64xf32>, vector<64x256xf32>, vector<2x256xf32> -> vector<2x256xf32>
    %115 = vector.extract_strided_slice %114 {offsets = [0, 128], sizes = [2, 128], strides = [1, 1]} : vector<2x256xf32> to vector<2x128xf32>
    %116 = vector.broadcast %7 : vector<1x128xf32> to vector<2x128xf32>
    %117 = arith.addf %115, %116 : vector<2x128xf32>
    %118 = vector.extract_strided_slice %114 {offsets = [0, 0], sizes = [2, 128], strides = [1, 1]} : vector<2x256xf32> to vector<2x128xf32>
    %119 = arith.addf %118, %42 : vector<2x128xf32>
    %120 = arith.negf %117 : vector<2x128xf32>
    %121 = math.exp %120 : vector<2x128xf32>
    %cst_31 = arith.constant 1.000000e+00 : f32
    %122 = vector.broadcast %cst_31 : f32 to vector<2x128xf32>
    %123 = arith.addf %122, %121 : vector<2x128xf32>
    %124 = arith.divf %122, %123 : vector<2x128xf32>
    %125 = math.tanh %117 : vector<2x128xf32>
    %126 = vector.extract_strided_slice %124 {offsets = [0, 0], sizes = [2, 32], strides = [1, 1]} : vector<2x128xf32> to vector<2x32xf32>
    %127 = vector.extract_strided_slice %124 {offsets = [0, 32], sizes = [2, 32], strides = [1, 1]} : vector<2x128xf32> to vector<2x32xf32>
    %128 = vector.extract_strided_slice %125 {offsets = [0, 64], sizes = [2, 32], strides = [1, 1]} : vector<2x128xf32> to vector<2x32xf32>
    %129 = vector.extract_strided_slice %124 {offsets = [0, 96], sizes = [2, 32], strides = [1, 1]} : vector<2x128xf32> to vector<2x32xf32>
    %130 = arith.mulf %127, %95 : vector<2x32xf32>
    %131 = arith.mulf %126, %128 : vector<2x32xf32>
    %132 = arith.addf %130, %131 : vector<2x32xf32>
    %133 = math.tanh %132 : vector<2x32xf32>
    %134 = arith.mulf %129, %133 : vector<2x32xf32>
    %135 = arith.negf %119 : vector<2x128xf32>
    %136 = math.exp %135 : vector<2x128xf32>
    %cst_32 = arith.constant 1.000000e+00 : f32
    %137 = vector.broadcast %cst_32 : f32 to vector<2x128xf32>
    %138 = arith.addf %137, %136 : vector<2x128xf32>
    %139 = arith.divf %137, %138 : vector<2x128xf32>
    %140 = math.tanh %119 : vector<2x128xf32>
    %141 = vector.extract_strided_slice %139 {offsets = [0, 0], sizes = [2, 32], strides = [1, 1]} : vector<2x128xf32> to vector<2x32xf32>
    %142 = vector.extract_strided_slice %139 {offsets = [0, 32], sizes = [2, 32], strides = [1, 1]} : vector<2x128xf32> to vector<2x32xf32>
    %143 = vector.extract_strided_slice %140 {offsets = [0, 64], sizes = [2, 32], strides = [1, 1]} : vector<2x128xf32> to vector<2x32xf32>
    %144 = vector.extract_strided_slice %139 {offsets = [0, 96], sizes = [2, 32], strides = [1, 1]} : vector<2x128xf32> to vector<2x32xf32>
    %145 = arith.mulf %142, %110 : vector<2x32xf32>
    %146 = arith.mulf %141, %143 : vector<2x32xf32>
    %147 = arith.addf %145, %146 : vector<2x32xf32>
    %148 = math.tanh %147 : vector<2x32xf32>
    %149 = arith.mulf %144, %148 : vector<2x32xf32>
    %150 = tpu.concatenate %149, %134 in 1 : vector<2x32xf32>, vector<2x32xf32> -> vector<2x64xf32>
    %cst_33 = arith.constant dense<0.000000e+00> : vector<2x256xf32>
    %151 = tpu.matmul %150, %1, %cst_33 {dimension_numbers = #tpu.dot_dimension_numbers<[1], [0], [0], [1], [0, 0, 1, 1], [], []>} : vector<2x64xf32>, vector<64x256xf32>, vector<2x256xf32> -> vector<2x256xf32>
    %152 = vector.extract_strided_slice %151 {offsets = [0, 128], sizes = [2, 128], strides = [1, 1]} : vector<2x256xf32> to vector<2x128xf32>
    %153 = vector.broadcast %7 : vector<1x128xf32> to vector<2x128xf32>
    %154 = arith.addf %152, %153 : vector<2x128xf32>
    %155 = vector.extract_strided_slice %151 {offsets = [0, 0], sizes = [2, 128], strides = [1, 1]} : vector<2x256xf32> to vector<2x128xf32>
    %156 = arith.addf %155, %45 : vector<2x128xf32>
    %157 = arith.negf %154 : vector<2x128xf32>
    %158 = math.exp %157 : vector<2x128xf32>
    %cst_34 = arith.constant 1.000000e+00 : f32
    %159 = vector.broadcast %cst_34 : f32 to vector<2x128xf32>
    %160 = arith.addf %159, %158 : vector<2x128xf32>
    %161 = arith.divf %159, %160 : vector<2x128xf32>
    %162 = math.tanh %154 : vector<2x128xf32>
    %163 = vector.extract_strided_slice %161 {offsets = [0, 0], sizes = [2, 32], strides = [1, 1]} : vector<2x128xf32> to vector<2x32xf32>
    %164 = vector.extract_strided_slice %161 {offsets = [0, 32], sizes = [2, 32], strides = [1, 1]} : vector<2x128xf32> to vector<2x32xf32>
    %165 = vector.extract_strided_slice %162 {offsets = [0, 64], sizes = [2, 32], strides = [1, 1]} : vector<2x128xf32> to vector<2x32xf32>
    %166 = vector.extract_strided_slice %161 {offsets = [0, 96], sizes = [2, 32], strides = [1, 1]} : vector<2x128xf32> to vector<2x32xf32>
    %167 = arith.mulf %164, %132 : vector<2x32xf32>
    %168 = arith.mulf %163, %165 : vector<2x32xf32>
    %169 = arith.addf %167, %168 : vector<2x32xf32>
    %170 = math.tanh %169 : vector<2x32xf32>
    %171 = arith.mulf %166, %170 : vector<2x32xf32>
    %172 = arith.negf %156 : vector<2x128xf32>
    %173 = math.exp %172 : vector<2x128xf32>
    %cst_35 = arith.constant 1.000000e+00 : f32
    %174 = vector.broadcast %cst_35 : f32 to vector<2x128xf32>
    %175 = arith.addf %174, %173 : vector<2x128xf32>
    %176 = arith.divf %174, %175 : vector<2x128xf32>
    %177 = math.tanh %156 : vector<2x128xf32>
    %178 = vector.extract_strided_slice %176 {offsets = [0, 0], sizes = [2, 32], strides = [1, 1]} : vector<2x128xf32> to vector<2x32xf32>
    %179 = vector.extract_strided_slice %176 {offsets = [0, 32], sizes = [2, 32], strides = [1, 1]} : vector<2x128xf32> to vector<2x32xf32>
    %180 = vector.extract_strided_slice %177 {offsets = [0, 64], sizes = [2, 32], strides = [1, 1]} : vector<2x128xf32> to vector<2x32xf32>
    %181 = vector.extract_strided_slice %176 {offsets = [0, 96], sizes = [2, 32], strides = [1, 1]} : vector<2x128xf32> to vector<2x32xf32>
    %182 = arith.mulf %179, %147 : vector<2x32xf32>
    %183 = arith.mulf %178, %180 : vector<2x32xf32>
    %184 = arith.addf %182, %183 : vector<2x32xf32>
    %185 = math.tanh %184 : vector<2x32xf32>
    %186 = arith.mulf %181, %185 : vector<2x32xf32>
    %187 = tpu.concatenate %186, %171 in 1 : vector<2x32xf32>, vector<2x32xf32> -> vector<2x64xf32>
    %cst_36 = arith.constant dense<0.000000e+00> : vector<2x256xf32>
    %188 = tpu.matmul %187, %1, %cst_36 {dimension_numbers = #tpu.dot_dimension_numbers<[1], [0], [0], [1], [0, 0, 1, 1], [], []>} : vector<2x64xf32>, vector<64x256xf32>, vector<2x256xf32> -> vector<2x256xf32>
    %189 = vector.extract_strided_slice %188 {offsets = [0, 128], sizes = [2, 128], strides = [1, 1]} : vector<2x256xf32> to vector<2x128xf32>
    %190 = vector.broadcast %7 : vector<1x128xf32> to vector<2x128xf32>
    %191 = arith.addf %189, %190 : vector<2x128xf32>
    %192 = vector.extract_strided_slice %188 {offsets = [0, 0], sizes = [2, 128], strides = [1, 1]} : vector<2x256xf32> to vector<2x128xf32>
    %193 = arith.addf %192, %48 : vector<2x128xf32>
    %194 = arith.negf %191 : vector<2x128xf32>
    %195 = math.exp %194 : vector<2x128xf32>
    %cst_37 = arith.constant 1.000000e+00 : f32
    %196 = vector.broadcast %cst_37 : f32 to vector<2x128xf32>
    %197 = arith.addf %196, %195 : vector<2x128xf32>
    %198 = arith.divf %196, %197 : vector<2x128xf32>
    %199 = math.tanh %191 : vector<2x128xf32>
    %200 = vector.extract_strided_slice %198 {offsets = [0, 0], sizes = [2, 32], strides = [1, 1]} : vector<2x128xf32> to vector<2x32xf32>
    %201 = vector.extract_strided_slice %198 {offsets = [0, 32], sizes = [2, 32], strides = [1, 1]} : vector<2x128xf32> to vector<2x32xf32>
    %202 = vector.extract_strided_slice %199 {offsets = [0, 64], sizes = [2, 32], strides = [1, 1]} : vector<2x128xf32> to vector<2x32xf32>
    %203 = vector.extract_strided_slice %198 {offsets = [0, 96], sizes = [2, 32], strides = [1, 1]} : vector<2x128xf32> to vector<2x32xf32>
    %204 = arith.mulf %201, %169 : vector<2x32xf32>
    %205 = arith.mulf %200, %202 : vector<2x32xf32>
    %206 = arith.addf %204, %205 : vector<2x32xf32>
    %207 = math.tanh %206 : vector<2x32xf32>
    %208 = arith.mulf %203, %207 : vector<2x32xf32>
    %209 = arith.negf %193 : vector<2x128xf32>
    %210 = math.exp %209 : vector<2x128xf32>
    %cst_38 = arith.constant 1.000000e+00 : f32
    %211 = vector.broadcast %cst_38 : f32 to vector<2x128xf32>
    %212 = arith.addf %211, %210 : vector<2x128xf32>
    %213 = arith.divf %211, %212 : vector<2x128xf32>
    %214 = math.tanh %193 : vector<2x128xf32>
    %215 = vector.extract_strided_slice %213 {offsets = [0, 0], sizes = [2, 32], strides = [1, 1]} : vector<2x128xf32> to vector<2x32xf32>
    %216 = vector.extract_strided_slice %213 {offsets = [0, 32], sizes = [2, 32], strides = [1, 1]} : vector<2x128xf32> to vector<2x32xf32>
    %217 = vector.extract_strided_slice %214 {offsets = [0, 64], sizes = [2, 32], strides = [1, 1]} : vector<2x128xf32> to vector<2x32xf32>
    %218 = vector.extract_strided_slice %213 {offsets = [0, 96], sizes = [2, 32], strides = [1, 1]} : vector<2x128xf32> to vector<2x32xf32>
    %219 = arith.mulf %216, %184 : vector<2x32xf32>
    %220 = arith.mulf %215, %217 : vector<2x32xf32>
    %221 = arith.addf %219, %220 : vector<2x32xf32>
    %222 = math.tanh %221 : vector<2x32xf32>
    %223 = arith.mulf %218, %222 : vector<2x32xf32>
    %224 = tpu.concatenate %223, %208 in 1 : vector<2x32xf32>, vector<2x32xf32> -> vector<2x64xf32>
    %cst_39 = arith.constant dense<0.000000e+00> : vector<2x256xf32>
    %225 = tpu.matmul %224, %1, %cst_39 {dimension_numbers = #tpu.dot_dimension_numbers<[1], [0], [0], [1], [0, 0, 1, 1], [], []>} : vector<2x64xf32>, vector<64x256xf32>, vector<2x256xf32> -> vector<2x256xf32>
    %226 = vector.extract_strided_slice %225 {offsets = [0, 128], sizes = [2, 128], strides = [1, 1]} : vector<2x256xf32> to vector<2x128xf32>
    %227 = vector.broadcast %7 : vector<1x128xf32> to vector<2x128xf32>
    %228 = arith.addf %226, %227 : vector<2x128xf32>
    %229 = vector.extract_strided_slice %225 {offsets = [0, 0], sizes = [2, 128], strides = [1, 1]} : vector<2x256xf32> to vector<2x128xf32>
    %230 = arith.addf %229, %51 : vector<2x128xf32>
    %231 = arith.negf %228 : vector<2x128xf32>
    %232 = math.exp %231 : vector<2x128xf32>
    %cst_40 = arith.constant 1.000000e+00 : f32
    %233 = vector.broadcast %cst_40 : f32 to vector<2x128xf32>
    %234 = arith.addf %233, %232 : vector<2x128xf32>
    %235 = arith.divf %233, %234 : vector<2x128xf32>
    %236 = math.tanh %228 : vector<2x128xf32>
    %237 = vector.extract_strided_slice %235 {offsets = [0, 0], sizes = [2, 32], strides = [1, 1]} : vector<2x128xf32> to vector<2x32xf32>
    %238 = vector.extract_strided_slice %235 {offsets = [0, 32], sizes = [2, 32], strides = [1, 1]} : vector<2x128xf32> to vector<2x32xf32>
    %239 = vector.extract_strided_slice %236 {offsets = [0, 64], sizes = [2, 32], strides = [1, 1]} : vector<2x128xf32> to vector<2x32xf32>
    %240 = vector.extract_strided_slice %235 {offsets = [0, 96], sizes = [2, 32], strides = [1, 1]} : vector<2x128xf32> to vector<2x32xf32>
    %241 = arith.mulf %238, %206 : vector<2x32xf32>
    %242 = arith.mulf %237, %239 : vector<2x32xf32>
    %243 = arith.addf %241, %242 : vector<2x32xf32>
    %244 = math.tanh %243 : vector<2x32xf32>
    %245 = arith.mulf %240, %244 : vector<2x32xf32>
    %246 = arith.negf %230 : vector<2x128xf32>
    %247 = math.exp %246 : vector<2x128xf32>
    %cst_41 = arith.constant 1.000000e+00 : f32
    %248 = vector.broadcast %cst_41 : f32 to vector<2x128xf32>
    %249 = arith.addf %248, %247 : vector<2x128xf32>
    %250 = arith.divf %248, %249 : vector<2x128xf32>
    %251 = math.tanh %230 : vector<2x128xf32>
    %252 = vector.extract_strided_slice %250 {offsets = [0, 0], sizes = [2, 32], strides = [1, 1]} : vector<2x128xf32> to vector<2x32xf32>
    %253 = vector.extract_strided_slice %250 {offsets = [0, 32], sizes = [2, 32], strides = [1, 1]} : vector<2x128xf32> to vector<2x32xf32>
    %254 = vector.extract_strided_slice %251 {offsets = [0, 64], sizes = [2, 32], strides = [1, 1]} : vector<2x128xf32> to vector<2x32xf32>
    %255 = vector.extract_strided_slice %250 {offsets = [0, 96], sizes = [2, 32], strides = [1, 1]} : vector<2x128xf32> to vector<2x32xf32>
    %256 = arith.mulf %253, %221 : vector<2x32xf32>
    %257 = arith.mulf %252, %254 : vector<2x32xf32>
    %258 = arith.addf %256, %257 : vector<2x32xf32>
    %259 = math.tanh %258 : vector<2x32xf32>
    %260 = arith.mulf %255, %259 : vector<2x32xf32>
    %261 = tpu.concatenate %260, %245 in 1 : vector<2x32xf32>, vector<2x32xf32> -> vector<2x64xf32>
    %cst_42 = arith.constant dense<0.000000e+00> : vector<2x256xf32>
    %262 = tpu.matmul %261, %1, %cst_42 {dimension_numbers = #tpu.dot_dimension_numbers<[1], [0], [0], [1], [0, 0, 1, 1], [], []>} : vector<2x64xf32>, vector<64x256xf32>, vector<2x256xf32> -> vector<2x256xf32>
    %263 = vector.extract_strided_slice %262 {offsets = [0, 128], sizes = [2, 128], strides = [1, 1]} : vector<2x256xf32> to vector<2x128xf32>
    %264 = vector.broadcast %7 : vector<1x128xf32> to vector<2x128xf32>
    %265 = arith.addf %263, %264 : vector<2x128xf32>
    %266 = vector.extract_strided_slice %262 {offsets = [0, 0], sizes = [2, 128], strides = [1, 1]} : vector<2x256xf32> to vector<2x128xf32>
    %267 = arith.addf %266, %54 : vector<2x128xf32>
    %268 = arith.negf %265 : vector<2x128xf32>
    %269 = math.exp %268 : vector<2x128xf32>
    %cst_43 = arith.constant 1.000000e+00 : f32
    %270 = vector.broadcast %cst_43 : f32 to vector<2x128xf32>
    %271 = arith.addf %270, %269 : vector<2x128xf32>
    %272 = arith.divf %270, %271 : vector<2x128xf32>
    %273 = math.tanh %265 : vector<2x128xf32>
    %274 = vector.extract_strided_slice %272 {offsets = [0, 0], sizes = [2, 32], strides = [1, 1]} : vector<2x128xf32> to vector<2x32xf32>
    %275 = vector.extract_strided_slice %272 {offsets = [0, 32], sizes = [2, 32], strides = [1, 1]} : vector<2x128xf32> to vector<2x32xf32>
    %276 = vector.extract_strided_slice %273 {offsets = [0, 64], sizes = [2, 32], strides = [1, 1]} : vector<2x128xf32> to vector<2x32xf32>
    %277 = vector.extract_strided_slice %272 {offsets = [0, 96], sizes = [2, 32], strides = [1, 1]} : vector<2x128xf32> to vector<2x32xf32>
    %278 = arith.mulf %275, %243 : vector<2x32xf32>
    %279 = arith.mulf %274, %276 : vector<2x32xf32>
    %280 = arith.addf %278, %279 : vector<2x32xf32>
    %281 = math.tanh %280 : vector<2x32xf32>
    %282 = arith.mulf %277, %281 : vector<2x32xf32>
    %283 = arith.negf %267 : vector<2x128xf32>
    %284 = math.exp %283 : vector<2x128xf32>
    %cst_44 = arith.constant 1.000000e+00 : f32
    %285 = vector.broadcast %cst_44 : f32 to vector<2x128xf32>
    %286 = arith.addf %285, %284 : vector<2x128xf32>
    %287 = arith.divf %285, %286 : vector<2x128xf32>
    %288 = math.tanh %267 : vector<2x128xf32>
    %289 = vector.extract_strided_slice %287 {offsets = [0, 0], sizes = [2, 32], strides = [1, 1]} : vector<2x128xf32> to vector<2x32xf32>
    %290 = vector.extract_strided_slice %287 {offsets = [0, 32], sizes = [2, 32], strides = [1, 1]} : vector<2x128xf32> to vector<2x32xf32>
    %291 = vector.extract_strided_slice %288 {offsets = [0, 64], sizes = [2, 32], strides = [1, 1]} : vector<2x128xf32> to vector<2x32xf32>
    %292 = vector.extract_strided_slice %287 {offsets = [0, 96], sizes = [2, 32], strides = [1, 1]} : vector<2x128xf32> to vector<2x32xf32>
    %293 = arith.mulf %290, %258 : vector<2x32xf32>
    %294 = arith.mulf %289, %291 : vector<2x32xf32>
    %295 = arith.addf %293, %294 : vector<2x32xf32>
    %296 = math.tanh %295 : vector<2x32xf32>
    %297 = arith.mulf %292, %296 : vector<2x32xf32>
    %298 = tpu.concatenate %297, %282 in 1 : vector<2x32xf32>, vector<2x32xf32> -> vector<2x64xf32>
    %cst_45 = arith.constant dense<0.000000e+00> : vector<2x256xf32>
    %299 = tpu.matmul %298, %1, %cst_45 {dimension_numbers = #tpu.dot_dimension_numbers<[1], [0], [0], [1], [0, 0, 1, 1], [], []>} : vector<2x64xf32>, vector<64x256xf32>, vector<2x256xf32> -> vector<2x256xf32>
    %300 = vector.extract_strided_slice %299 {offsets = [0, 128], sizes = [2, 128], strides = [1, 1]} : vector<2x256xf32> to vector<2x128xf32>
    %301 = vector.broadcast %7 : vector<1x128xf32> to vector<2x128xf32>
    %302 = arith.addf %300, %301 : vector<2x128xf32>
    %303 = vector.extract_strided_slice %299 {offsets = [0, 0], sizes = [2, 128], strides = [1, 1]} : vector<2x256xf32> to vector<2x128xf32>
    %304 = arith.addf %303, %57 : vector<2x128xf32>
    %305 = arith.negf %302 : vector<2x128xf32>
    %306 = math.exp %305 : vector<2x128xf32>
    %cst_46 = arith.constant 1.000000e+00 : f32
    %307 = vector.broadcast %cst_46 : f32 to vector<2x128xf32>
    %308 = arith.addf %307, %306 : vector<2x128xf32>
    %309 = arith.divf %307, %308 : vector<2x128xf32>
    %310 = math.tanh %302 : vector<2x128xf32>
    %311 = vector.extract_strided_slice %309 {offsets = [0, 0], sizes = [2, 32], strides = [1, 1]} : vector<2x128xf32> to vector<2x32xf32>
    %312 = vector.extract_strided_slice %309 {offsets = [0, 32], sizes = [2, 32], strides = [1, 1]} : vector<2x128xf32> to vector<2x32xf32>
    %313 = vector.extract_strided_slice %310 {offsets = [0, 64], sizes = [2, 32], strides = [1, 1]} : vector<2x128xf32> to vector<2x32xf32>
    %314 = vector.extract_strided_slice %309 {offsets = [0, 96], sizes = [2, 32], strides = [1, 1]} : vector<2x128xf32> to vector<2x32xf32>
    %315 = arith.mulf %312, %280 : vector<2x32xf32>
    %316 = arith.mulf %311, %313 : vector<2x32xf32>
    %317 = arith.addf %315, %316 : vector<2x32xf32>
    %318 = math.tanh %317 : vector<2x32xf32>
    %319 = arith.mulf %314, %318 : vector<2x32xf32>
    %320 = arith.negf %304 : vector<2x128xf32>
    %321 = math.exp %320 : vector<2x128xf32>
    %cst_47 = arith.constant 1.000000e+00 : f32
    %322 = vector.broadcast %cst_47 : f32 to vector<2x128xf32>
    %323 = arith.addf %322, %321 : vector<2x128xf32>
    %324 = arith.divf %322, %323 : vector<2x128xf32>
    %325 = math.tanh %304 : vector<2x128xf32>
    %326 = vector.extract_strided_slice %324 {offsets = [0, 0], sizes = [2, 32], strides = [1, 1]} : vector<2x128xf32> to vector<2x32xf32>
    %327 = vector.extract_strided_slice %324 {offsets = [0, 32], sizes = [2, 32], strides = [1, 1]} : vector<2x128xf32> to vector<2x32xf32>
    %328 = vector.extract_strided_slice %325 {offsets = [0, 64], sizes = [2, 32], strides = [1, 1]} : vector<2x128xf32> to vector<2x32xf32>
    %329 = vector.extract_strided_slice %324 {offsets = [0, 96], sizes = [2, 32], strides = [1, 1]} : vector<2x128xf32> to vector<2x32xf32>
    %330 = arith.mulf %327, %295 : vector<2x32xf32>
    %331 = arith.mulf %326, %328 : vector<2x32xf32>
    %332 = arith.addf %330, %331 : vector<2x32xf32>
    %333 = math.tanh %332 : vector<2x32xf32>
    %334 = arith.mulf %329, %333 : vector<2x32xf32>
    %335 = tpu.concatenate %334, %319 in 1 : vector<2x32xf32>, vector<2x32xf32> -> vector<2x64xf32>
    %cst_48 = arith.constant dense<0.000000e+00> : vector<2x256xf32>
    %336 = tpu.matmul %335, %1, %cst_48 {dimension_numbers = #tpu.dot_dimension_numbers<[1], [0], [0], [1], [0, 0, 1, 1], [], []>} : vector<2x64xf32>, vector<64x256xf32>, vector<2x256xf32> -> vector<2x256xf32>
    %337 = vector.extract_strided_slice %336 {offsets = [0, 128], sizes = [2, 128], strides = [1, 1]} : vector<2x256xf32> to vector<2x128xf32>
    %338 = vector.broadcast %7 : vector<1x128xf32> to vector<2x128xf32>
    %339 = arith.addf %337, %338 : vector<2x128xf32>
    %340 = arith.negf %339 : vector<2x128xf32>
    %341 = math.exp %340 : vector<2x128xf32>
    %cst_49 = arith.constant 1.000000e+00 : f32
    %342 = vector.broadcast %cst_49 : f32 to vector<2x128xf32>
    %343 = arith.addf %342, %341 : vector<2x128xf32>
    %344 = arith.divf %342, %343 : vector<2x128xf32>
    %345 = math.tanh %339 : vector<2x128xf32>
    %346 = vector.extract_strided_slice %344 {offsets = [0, 0], sizes = [2, 32], strides = [1, 1]} : vector<2x128xf32> to vector<2x32xf32>
    %347 = vector.extract_strided_slice %344 {offsets = [0, 32], sizes = [2, 32], strides = [1, 1]} : vector<2x128xf32> to vector<2x32xf32>
    %348 = vector.extract_strided_slice %345 {offsets = [0, 64], sizes = [2, 32], strides = [1, 1]} : vector<2x128xf32> to vector<2x32xf32>
    %349 = vector.extract_strided_slice %344 {offsets = [0, 96], sizes = [2, 32], strides = [1, 1]} : vector<2x128xf32> to vector<2x32xf32>
    %350 = arith.mulf %347, %317 : vector<2x32xf32>
    %351 = arith.mulf %346, %348 : vector<2x32xf32>
    %352 = arith.addf %350, %351 : vector<2x32xf32>
    %353 = math.tanh %352 : vector<2x32xf32>
    %354 = arith.mulf %349, %353 : vector<2x32xf32>
    %355 = tpu.concatenate %97, %134, %171, %208, %245, %282, %319, %354 in 0 : vector<2x32xf32>, vector<2x32xf32>, vector<2x32xf32>, vector<2x32xf32>, vector<2x32xf32>, vector<2x32xf32>, vector<2x32xf32>, vector<2x32xf32> -> vector<16x32xf32>
    %cst_50 = arith.constant dense<0.000000e+00> : vector<16x96xf32>
    %356 = tpu.matmul %355, %2, %cst_50 {dimension_numbers = #tpu.dot_dimension_numbers<[1], [0], [0], [1], [0, 0, 1, 1], [], []>} : vector<16x32xf32>, vector<32x96xf32>, vector<16x96xf32> -> vector<16x96xf32>
    %357 = vector.broadcast %8 : vector<1x96xf32> to vector<16x96xf32>
    %358 = arith.addf %356, %357 : vector<16x96xf32>
    %359 = vector.extract_strided_slice %358 {offsets = [0, 0], sizes = [16, 32], strides = [1, 1]} : vector<16x96xf32> to vector<16x32xf32>
    %360 = vector.extract_strided_slice %358 {offsets = [0, 32], sizes = [16, 32], strides = [1, 1]} : vector<16x96xf32> to vector<16x32xf32>
    %361 = vector.extract_strided_slice %358 {offsets = [0, 64], sizes = [16, 32], strides = [1, 1]} : vector<16x96xf32> to vector<16x32xf32>
    %362 = tpu.iota {dimensions = array<i32: 0>} : vector<16x16xi32>
    %363 = tpu.iota {dimensions = array<i32: 1>} : vector<16x16xi32>
    %c2_i32 = arith.constant 2 : i32
    %c0_i32 = arith.constant 0 : i32
    %364 = arith.cmpi eq, %c2_i32, %c0_i32 : i32
    %c1_i32 = arith.constant 1 : i32
    %365 = arith.select %364, %c1_i32, %c2_i32 : i32
    %366 = vector.broadcast %365 : i32 to vector<16x16xi32>
    %367 = arith.remsi %362, %366 : vector<16x16xi32>
    %c0_i32_51 = arith.constant 0 : i32
    %368 = vector.broadcast %c0_i32_51 : i32 to vector<16x16xi32>
    %369 = arith.cmpi ne, %367, %368 : vector<16x16xi32>
    %c0_i32_52 = arith.constant 0 : i32
    %370 = vector.broadcast %c0_i32_52 : i32 to vector<16x16xi32>
    %371 = arith.cmpi slt, %367, %370 : vector<16x16xi32>
    %c0_i32_53 = arith.constant 0 : i32
    %372 = arith.cmpi slt, %365, %c0_i32_53 : i32
    %373 = vector.broadcast %372 : i1 to vector<16x16xi1>
    %374 = vector.broadcast %373 : vector<16x16xi1> to vector<16x16xi1>
    %375 = arith.xori %371, %374 : vector<16x16xi1>
    %376 = arith.andi %375, %369 : vector<16x16xi1>
    %377 = vector.broadcast %365 : i32 to vector<16x16xi32>
    %378 = arith.addi %367, %377 : vector<16x16xi32>
    %379 = arith.select %376, %378, %367 : vector<16x16xi1>, vector<16x16xi32>
    %c2_i32_54 = arith.constant 2 : i32
    %c0_i32_55 = arith.constant 0 : i32
    %380 = arith.cmpi eq, %c2_i32_54, %c0_i32_55 : i32
    %c1_i32_56 = arith.constant 1 : i32
    %381 = arith.select %380, %c1_i32_56, %c2_i32_54 : i32
    %382 = vector.broadcast %381 : i32 to vector<16x16xi32>
    %383 = arith.remsi %363, %382 : vector<16x16xi32>
    %c0_i32_57 = arith.constant 0 : i32
    %384 = vector.broadcast %c0_i32_57 : i32 to vector<16x16xi32>
    %385 = arith.cmpi ne, %383, %384 : vector<16x16xi32>
    %c0_i32_58 = arith.constant 0 : i32
    %386 = vector.broadcast %c0_i32_58 : i32 to vector<16x16xi32>
    %387 = arith.cmpi slt, %383, %386 : vector<16x16xi32>
    %c0_i32_59 = arith.constant 0 : i32
    %388 = arith.cmpi slt, %381, %c0_i32_59 : i32
    %389 = vector.broadcast %388 : i1 to vector<16x16xi1>
    %390 = vector.broadcast %389 : vector<16x16xi1> to vector<16x16xi1>
    %391 = arith.xori %387, %390 : vector<16x16xi1>
    %392 = arith.andi %391, %385 : vector<16x16xi1>
    %393 = vector.broadcast %381 : i32 to vector<16x16xi32>
    %394 = arith.addi %383, %393 : vector<16x16xi32>
    %395 = arith.select %392, %394, %383 : vector<16x16xi1>, vector<16x16xi32>
    %396 = arith.cmpi eq, %379, %395 : vector<16x16xi32>
    %397 = vector.extract_strided_slice %359 {offsets = [0, 0], sizes = [16, 8], strides = [1, 1]} : vector<16x32xf32> to vector<16x8xf32>
    %cst_60 = arith.constant 0.353553385 : f32
    %398 = vector.broadcast %cst_60 : f32 to vector<16x8xf32>
    %399 = arith.mulf %397, %398 : vector<16x8xf32>
    %400 = vector.extract_strided_slice %360 {offsets = [0, 0], sizes = [16, 8], strides = [1, 1]} : vector<16x32xf32> to vector<16x8xf32>
    %401 = vector.extract_strided_slice %361 {offsets = [0, 0], sizes = [16, 8], strides = [1, 1]} : vector<16x32xf32> to vector<16x8xf32>
    %cst_61 = arith.constant dense<0.000000e+00> : vector<16x16xf32>
    %402 = tpu.matmul %399, %400, %cst_61 {dimension_numbers = #tpu.dot_dimension_numbers<[1], [1], [0], [0], [0, 0, 1, 0], [], []>} : vector<16x8xf32>, vector<16x8xf32>, vector<16x16xf32> -> vector<16x16xf32>
    %cst_62 = arith.constant -1.000000e+30 : f32
    %403 = vector.broadcast %cst_62 : f32 to vector<16x16xf32>
    %404 = arith.select %396, %402, %403 : vector<16x16xi1>, vector<16x16xf32>
    %cst_63 = arith.constant dense<0xFF800000> : vector<16xf32>
    %405 = vector.multi_reduction <maximumf>, %404, %cst_63 [1] : vector<16x16xf32> to vector<16xf32>
    %406 = vector.shape_cast %405 : vector<16xf32> to vector<16x1xf32>
    %407 = vector.broadcast %406 : vector<16x1xf32> to vector<16x16xf32>
    %408 = arith.subf %404, %407 : vector<16x16xf32>
    %409 = math.exp %408 : vector<16x16xf32>
    %cst_64 = arith.constant dense<0.000000e+00> : vector<16xf32>
    %410 = vector.multi_reduction <add>, %409, %cst_64 [1] : vector<16x16xf32> to vector<16xf32>
    %411 = vector.shape_cast %410 : vector<16xf32> to vector<16x1xf32>
    %412 = tpu.reciprocal %411 {approx = true} : vector<16x1xf32> -> vector<16x1xf32>
    %413 = vector.broadcast %412 : vector<16x1xf32> to vector<16x16xf32>
    %414 = arith.mulf %409, %413 : vector<16x16xf32>
    %cst_65 = arith.constant dense<0.000000e+00> : vector<16x8xf32>
    %415 = tpu.matmul %414, %401, %cst_65 {dimension_numbers = #tpu.dot_dimension_numbers<[1], [0], [0], [1], [0, 0, 1, 1], [], []>} : vector<16x16xf32>, vector<16x8xf32>, vector<16x8xf32> -> vector<16x8xf32>
    %416 = vector.extract_strided_slice %359 {offsets = [0, 8], sizes = [16, 8], strides = [1, 1]} : vector<16x32xf32> to vector<16x8xf32>
    %cst_66 = arith.constant 0.353553385 : f32
    %417 = vector.broadcast %cst_66 : f32 to vector<16x8xf32>
    %418 = arith.mulf %416, %417 : vector<16x8xf32>
    %419 = vector.extract_strided_slice %360 {offsets = [0, 8], sizes = [16, 8], strides = [1, 1]} : vector<16x32xf32> to vector<16x8xf32>
    %420 = vector.extract_strided_slice %361 {offsets = [0, 8], sizes = [16, 8], strides = [1, 1]} : vector<16x32xf32> to vector<16x8xf32>
    %cst_67 = arith.constant dense<0.000000e+00> : vector<16x16xf32>
    %421 = tpu.matmul %418, %419, %cst_67 {dimension_numbers = #tpu.dot_dimension_numbers<[1], [1], [0], [0], [0, 0, 1, 0], [], []>} : vector<16x8xf32>, vector<16x8xf32>, vector<16x16xf32> -> vector<16x16xf32>
    %cst_68 = arith.constant -1.000000e+30 : f32
    %422 = vector.broadcast %cst_68 : f32 to vector<16x16xf32>
    %423 = arith.select %396, %421, %422 : vector<16x16xi1>, vector<16x16xf32>
    %cst_69 = arith.constant dense<0xFF800000> : vector<16xf32>
    %424 = vector.multi_reduction <maximumf>, %423, %cst_69 [1] : vector<16x16xf32> to vector<16xf32>
    %425 = vector.shape_cast %424 : vector<16xf32> to vector<16x1xf32>
    %426 = vector.broadcast %425 : vector<16x1xf32> to vector<16x16xf32>
    %427 = arith.subf %423, %426 : vector<16x16xf32>
    %428 = math.exp %427 : vector<16x16xf32>
    %cst_70 = arith.constant dense<0.000000e+00> : vector<16xf32>
    %429 = vector.multi_reduction <add>, %428, %cst_70 [1] : vector<16x16xf32> to vector<16xf32>
    %430 = vector.shape_cast %429 : vector<16xf32> to vector<16x1xf32>
    %431 = tpu.reciprocal %430 {approx = true} : vector<16x1xf32> -> vector<16x1xf32>
    %432 = vector.broadcast %431 : vector<16x1xf32> to vector<16x16xf32>
    %433 = arith.mulf %428, %432 : vector<16x16xf32>
    %cst_71 = arith.constant dense<0.000000e+00> : vector<16x8xf32>
    %434 = tpu.matmul %433, %420, %cst_71 {dimension_numbers = #tpu.dot_dimension_numbers<[1], [0], [0], [1], [0, 0, 1, 1], [], []>} : vector<16x16xf32>, vector<16x8xf32>, vector<16x8xf32> -> vector<16x8xf32>
    %435 = vector.extract_strided_slice %359 {offsets = [0, 16], sizes = [16, 8], strides = [1, 1]} : vector<16x32xf32> to vector<16x8xf32>
    %cst_72 = arith.constant 0.353553385 : f32
    %436 = vector.broadcast %cst_72 : f32 to vector<16x8xf32>
    %437 = arith.mulf %435, %436 : vector<16x8xf32>
    %438 = vector.extract_strided_slice %360 {offsets = [0, 16], sizes = [16, 8], strides = [1, 1]} : vector<16x32xf32> to vector<16x8xf32>
    %439 = vector.extract_strided_slice %361 {offsets = [0, 16], sizes = [16, 8], strides = [1, 1]} : vector<16x32xf32> to vector<16x8xf32>
    %cst_73 = arith.constant dense<0.000000e+00> : vector<16x16xf32>
    %440 = tpu.matmul %437, %438, %cst_73 {dimension_numbers = #tpu.dot_dimension_numbers<[1], [1], [0], [0], [0, 0, 1, 0], [], []>} : vector<16x8xf32>, vector<16x8xf32>, vector<16x16xf32> -> vector<16x16xf32>
    %cst_74 = arith.constant -1.000000e+30 : f32
    %441 = vector.broadcast %cst_74 : f32 to vector<16x16xf32>
    %442 = arith.select %396, %440, %441 : vector<16x16xi1>, vector<16x16xf32>
    %cst_75 = arith.constant dense<0xFF800000> : vector<16xf32>
    %443 = vector.multi_reduction <maximumf>, %442, %cst_75 [1] : vector<16x16xf32> to vector<16xf32>
    %444 = vector.shape_cast %443 : vector<16xf32> to vector<16x1xf32>
    %445 = vector.broadcast %444 : vector<16x1xf32> to vector<16x16xf32>
    %446 = arith.subf %442, %445 : vector<16x16xf32>
    %447 = math.exp %446 : vector<16x16xf32>
    %cst_76 = arith.constant dense<0.000000e+00> : vector<16xf32>
    %448 = vector.multi_reduction <add>, %447, %cst_76 [1] : vector<16x16xf32> to vector<16xf32>
    %449 = vector.shape_cast %448 : vector<16xf32> to vector<16x1xf32>
    %450 = tpu.reciprocal %449 {approx = true} : vector<16x1xf32> -> vector<16x1xf32>
    %451 = vector.broadcast %450 : vector<16x1xf32> to vector<16x16xf32>
    %452 = arith.mulf %447, %451 : vector<16x16xf32>
    %cst_77 = arith.constant dense<0.000000e+00> : vector<16x8xf32>
    %453 = tpu.matmul %452, %439, %cst_77 {dimension_numbers = #tpu.dot_dimension_numbers<[1], [0], [0], [1], [0, 0, 1, 1], [], []>} : vector<16x16xf32>, vector<16x8xf32>, vector<16x8xf32> -> vector<16x8xf32>
    %454 = vector.extract_strided_slice %359 {offsets = [0, 24], sizes = [16, 8], strides = [1, 1]} : vector<16x32xf32> to vector<16x8xf32>
    %cst_78 = arith.constant 0.353553385 : f32
    %455 = vector.broadcast %cst_78 : f32 to vector<16x8xf32>
    %456 = arith.mulf %454, %455 : vector<16x8xf32>
    %457 = vector.extract_strided_slice %360 {offsets = [0, 24], sizes = [16, 8], strides = [1, 1]} : vector<16x32xf32> to vector<16x8xf32>
    %458 = vector.extract_strided_slice %361 {offsets = [0, 24], sizes = [16, 8], strides = [1, 1]} : vector<16x32xf32> to vector<16x8xf32>
    %cst_79 = arith.constant dense<0.000000e+00> : vector<16x16xf32>
    %459 = tpu.matmul %456, %457, %cst_79 {dimension_numbers = #tpu.dot_dimension_numbers<[1], [1], [0], [0], [0, 0, 1, 0], [], []>} : vector<16x8xf32>, vector<16x8xf32>, vector<16x16xf32> -> vector<16x16xf32>
    %cst_80 = arith.constant -1.000000e+30 : f32
    %460 = vector.broadcast %cst_80 : f32 to vector<16x16xf32>
    %461 = arith.select %396, %459, %460 : vector<16x16xi1>, vector<16x16xf32>
    %cst_81 = arith.constant dense<0xFF800000> : vector<16xf32>
    %462 = vector.multi_reduction <maximumf>, %461, %cst_81 [1] : vector<16x16xf32> to vector<16xf32>
    %463 = vector.shape_cast %462 : vector<16xf32> to vector<16x1xf32>
    %464 = vector.broadcast %463 : vector<16x1xf32> to vector<16x16xf32>
    %465 = arith.subf %461, %464 : vector<16x16xf32>
    %466 = math.exp %465 : vector<16x16xf32>
    %cst_82 = arith.constant dense<0.000000e+00> : vector<16xf32>
    %467 = vector.multi_reduction <add>, %466, %cst_82 [1] : vector<16x16xf32> to vector<16xf32>
    %468 = vector.shape_cast %467 : vector<16xf32> to vector<16x1xf32>
    %469 = tpu.reciprocal %468 {approx = true} : vector<16x1xf32> -> vector<16x1xf32>
    %470 = vector.broadcast %469 : vector<16x1xf32> to vector<16x16xf32>
    %471 = arith.mulf %466, %470 : vector<16x16xf32>
    %cst_83 = arith.constant dense<0.000000e+00> : vector<16x8xf32>
    %472 = tpu.matmul %471, %458, %cst_83 {dimension_numbers = #tpu.dot_dimension_numbers<[1], [0], [0], [1], [0, 0, 1, 1], [], []>} : vector<16x16xf32>, vector<16x8xf32>, vector<16x8xf32> -> vector<16x8xf32>
    %473 = tpu.concatenate %415, %434, %453, %472 in 1 : vector<16x8xf32>, vector<16x8xf32>, vector<16x8xf32>, vector<16x8xf32> -> vector<16x32xf32>
    %cst_84 = arith.constant dense<0.000000e+00> : vector<16x32xf32>
    %474 = tpu.matmul %473, %3, %cst_84 {dimension_numbers = #tpu.dot_dimension_numbers<[1], [0], [0], [1], [0, 0, 1, 1], [], []>} : vector<16x32xf32>, vector<32x32xf32>, vector<16x32xf32> -> vector<16x32xf32>
    %475 = vector.broadcast %9 : vector<1x32xf32> to vector<16x32xf32>
    %476 = arith.addf %474, %475 : vector<16x32xf32>
    %cst_85 = arith.constant 0.000000e+00 : f32
    %477 = vector.broadcast %cst_85 : f32 to vector<2x32xf32>
    %478 = vector.extract_strided_slice %476 {offsets = [0, 0], sizes = [2, 32], strides = [1, 1]} : vector<16x32xf32> to vector<2x32xf32>
    %479 = arith.addf %477, %478 : vector<2x32xf32>
    %480 = vector.extract_strided_slice %476 {offsets = [2, 0], sizes = [2, 32], strides = [1, 1]} : vector<16x32xf32> to vector<2x32xf32>
    %481 = arith.addf %479, %480 : vector<2x32xf32>
    %482 = vector.extract_strided_slice %476 {offsets = [4, 0], sizes = [2, 32], strides = [1, 1]} : vector<16x32xf32> to vector<2x32xf32>
    %483 = arith.addf %481, %482 : vector<2x32xf32>
    %484 = vector.extract_strided_slice %476 {offsets = [6, 0], sizes = [2, 32], strides = [1, 1]} : vector<16x32xf32> to vector<2x32xf32>
    %485 = arith.addf %483, %484 : vector<2x32xf32>
    %486 = vector.extract_strided_slice %476 {offsets = [8, 0], sizes = [2, 32], strides = [1, 1]} : vector<16x32xf32> to vector<2x32xf32>
    %487 = arith.addf %485, %486 : vector<2x32xf32>
    %488 = vector.extract_strided_slice %476 {offsets = [10, 0], sizes = [2, 32], strides = [1, 1]} : vector<16x32xf32> to vector<2x32xf32>
    %489 = arith.addf %487, %488 : vector<2x32xf32>
    %490 = vector.extract_strided_slice %476 {offsets = [12, 0], sizes = [2, 32], strides = [1, 1]} : vector<16x32xf32> to vector<2x32xf32>
    %491 = arith.addf %489, %490 : vector<2x32xf32>
    %492 = vector.extract_strided_slice %476 {offsets = [14, 0], sizes = [2, 32], strides = [1, 1]} : vector<16x32xf32> to vector<2x32xf32>
    %493 = arith.addf %491, %492 : vector<2x32xf32>
    %cst_86 = arith.constant 1.250000e-01 : f32
    %494 = vector.broadcast %cst_86 : f32 to vector<2x32xf32>
    %495 = arith.mulf %493, %494 : vector<2x32xf32>
    %c0_87 = arith.constant 0 : index
    %c0_88 = arith.constant 0 : index
    %496 = vector.load %arg7[%c0_87, %c0_88] : memref<2x32xf32, #tpu.memory_space<vmem>>, vector<2x32xf32>
    tpu.vector_store %arg7[%c0_87, %c0_88], %495 {strides = array<i32>} : memref<2x32xf32, #tpu.memory_space<vmem>>, vector<2x32xf32>,
    return
  }
}

</mosaic_0001>

<bundles_post_ra>
// kernel: ltsm_time_frame_forward.1
= control target key start
LH: loop header
LB: loop body
LE: loop exit
PB: predicated region body
PF: predicated region fallthrough
CT: control target
= control target key end

     0   :  { %vm61_vm0 = vcmask 138240   ;;  %s3580_s0 = inlined_call_operand.vmem [shape: f32[16,17], index: 0, kind: input, shape index: {}]   ;;  %s3581_s1 = inlined_call_operand.vmem [shape: f32[2,17], index: 1, kind: input, shape index: {}]   ;;  %s3582_s2 = inlined_call_operand.vmem [shape: f32[17,128], index: 2, kind: input, shape index: {}]   ;;  %s3583_s3 = inlined_call_operand.vmem [shape: f32[64,256], index: 3, kind: input, shape index: {}]   ;;  %s3584_s4 = inlined_call_operand.vmem [shape: f32[32,96], index: 4, kind: input, shape index: {}]   ;;  %s3585_s5 = inlined_call_operand.vmem [shape: f32[32,32], index: 5, kind: input, shape index: {}]   ;;  %s3586_s6 = inlined_call_operand.vmem [shape: f32[3,128], index: 6, kind: input, shape index: {}]   ;;  %s3587_s7 = inlined_call_operand.hbm [shape: f32[2,32], index: 7, kind: output, shape index: {}]  }
   0x1   :  { %v59_v0 = vld [vmem:[%s3580_s0] sm:$0xff]  ;;  %v60_v1 = vld [vmem:[%s3580_s0 + $0x8] sm:$0xff] }
   0x2   :  { %12 = vsyncpa [#allocation3], 0  ;;  %v62_v2 = vsel %vm61_vm0, %v59_v0, 0.0  ;;  %v65_v3 = vsel %vm61_vm0, %v60_v1, 0.0  ;;  %v27_v14 = vld [vmem:[%s3582_s2] sm:$0xff]  ;;  %v28_v15 = vld [vmem:[%s3582_s2 + $0x8] sm:$0xff] }
   0x3   :  { %63 = vadd.xlane.f32.xlu0 %v62_v2  ;;  %v2609_v16 = vpack.c.bf16 %v28_v15, %v27_v14  ;;  %v29_v17 = vld [vmem:[%s3582_s2 + $0x10] sm:$0x1]  ;;  %vm111_vm1 = vcmask 1040384   ;;  %v2413_v25 = vld [vmem:[%s3581_s1] ss:$0 sm:$0xff]  ;;  %s3043_s15 = smov 32  }
   0x4   :  { %v2414_v27 = vld [vmem:[%s3581_s1 + $0x1] ss:$0 sm:$0xff]  ;;  %v2415_v34 = vld [vmem:[%s3586_s6] ss:$0 sm:$0xff]  ;;  %s3042_s1 = smov 64   ;;  %vm256_vm2 = vcmask 261120  }
   0x5   :  { %2610 = vmatprep.subr.bf16.mxu0 %v2609_v16  ;;  %vm258_vm3 = vcmask 523264   ;;  %vm1305_vm4 = vcmask 1041408   ;;  %vm1307_vm5 = vcmask 1043456   ;;  %vm1309_vm6 = vcmask 1045504   ;;  %s3045_s10 = smov 96   ;;  %s3047_s11 = smov 120  }
   0x6   :  { %2612 = vmatpush3.bf16.msra.mxu0 %v2609_v16  ;;  %v34_v16 = vld [vmem:[%s3583_s3 + $0x20] sm:$0xff]  ;;  %vm1454_vm7 = vcmask 64512   ;;  %vm1542_vm11 = vcmask 130048   ;;  %s3048_s2 = smov 80   ;;  %s3049_s12 = smov 112   ;;  %vm2286_vm12 = vcmask 195584  }
   0x7   :  { %66 = vadd.xlane.f32.xlu0 %v65_v3  ;;  %2526 = vmatprep.subr.msk.mxu0 %vm111_vm1, %v29_v17  ;;  %vm3448_vm8 = vmpackc.low %vm1454_vm7, %vm1454_vm7  ;;  %s3051_s13 = smov 48   ;;  %s3052_s14 = smov 72   ;;  %vm2397_vm13 = vcmask 254976  }
   0x8   :  { %s3053_s16 = smov 104   ;;  %s3054_s17 = smov 8  }
   0x9   :  { %s3055_s18 = smov 16   ;;  %s3056_s19 = smov 40  }
   0xa   :  { %2527 = vmatpush3.msk.msra.mxu0 %vm111_vm1, %v29_v17  ;;  %v36_v17 = vld [vmem:[%s3583_s3 + $0x30] sm:$0xff]  ;;  %s3057_s27 = smov 24  }
  0x90   :  { %v64_v4 = vpop.xlane.xlu0 %63 }
  0x91   :  { %v69_v5 = vmul.f32 0.05882353, %v64_v4 }
  0x93   :  { %v71_v6 = vsub.f32 %v59_v0, %v69_v5 }
  0x94   :  { %v67_v7 = vpop.xlane.xlu0 %66 }
  0x95   :  { %v70_v8 = vmul.f32 0.05882353, %v67_v7  ;;  %v73_v9 = vmul.f32 %v71_v6, %v71_v6  ;;  %v31_v7 = vld [vmem:[%s3583_s3 + $0x8] sm:$0xff] }
  0x97   :  { %v72_v10 = vsub.f32 %v60_v1, %v70_v8  ;;  %v75_v11 = vsel %vm61_vm0, %v73_v9, 0.0  ;;  %v33_v8 = vld [vmem:[%s3583_s3 + $0x18] sm:$0xff]  ;;  %v30_v9 = vld [vmem:[%s3583_s3] sm:$0xff] }
  0x98   :  { %76 = vadd.xlane.f32.xlu1 %v75_v11  ;;  %v32_v11 = vld [vmem:[%s3583_s3 + $0x10] sm:$0xff] }
  0x99   :  { %v74_v12 = vmul.f32 %v72_v10, %v72_v10  ;;  %v3178_v14 = vpack.c.bf16 %v32_v11, %v30_v9 }
  0x9b   :  { %v78_v13 = vsel %vm61_vm0, %v74_v12, 0.0  ;;  %v35_v12 = vld [vmem:[%s3583_s3 + $0x28] sm:$0xff] }
  0x9c   :  { %79 = vadd.xlane.f32.xlu1 %v78_v13  ;;  %v37_v13 = vld [vmem:[%s3583_s3 + $0x38] sm:$0xff] }
  0x9d   :  { %v3180_v15 = vpack.c.bf16 %v37_v13, %v35_v12 }
 0x125   :  { %v77_v18 = vpop.xlane.xlu1 %76 }
 0x126   :  { %v81_v19 = vmul.f32 0.05882353, %v77_v18  ;;  %v39_v18 = vld [vmem:[%s3583_s3 + $0x48] sm:$0xff] }
 0x128   :  { %v83_v20 = vadd.f32 1e-05, %v81_v19  ;;  %v41_v19 = vld [vmem:[%s3583_s3 + $0x58] sm:$0xff] }
 0x129   :  { %v80_v21 = vpop.xlane.xlu1 %79 }
 0x12a   :  { %2854 = vrsqrt.f32 %v83_v20  ;;  %v82_v22 = vmul.f32 0.05882353, %v80_v21  ;;  %v3197_v20 = vpack.c.bf16 %v36_v17, %v34_v16  ;;  %v3201_v21 = vpack.c.bf16 %v41_v19, %v39_v18 }
 0x12c   :  { %v84_v23 = vadd.f32 1e-05, %v82_v22  ;;  %v38_v22 = vld [vmem:[%s3583_s3 + $0x40] sm:$0xff] }
 0x12e   :  { %2856 = vrsqrt.f32 %v84_v23  ;;  %v40_v23 = vld [vmem:[%s3583_s3 + $0x50] sm:$0xff] }
 0x134   :  { %v2855_v24 = vpop.eup %2854 }
 0x135   :  { %v87_v26 = vmul.f32 %v2855_v24, %v71_v6  ;;  %v43_v24 = vld [vmem:[%s3583_s3 + $0x68] sm:$0xff] }
 0x137   :  { %v93_v28 = vmul.f32 %v2413_v25, %v87_v26  ;;  %v3217_v26 = vpack.c.bf16 %v40_v23, %v38_v22 }
 0x138   :  { %v2857_v29 = vpop.eup %2856 }
 0x139   :  { %v88_v30 = vmul.f32 %v2857_v29, %v72_v10  ;;  %v99_v31 = vadd.f32 %v2414_v27, %v93_v28  ;;  %v3167_v10 = vpack.c.bf16 %v33_v8, %v31_v7  ;;  %v42_v28 = vld [vmem:[%s3583_s3 + $0x60] sm:$0xff]  ;;  %v44_v29 = vld [vmem:[%s3583_s3 + $0x70] sm:$0xff] }
 0x13b   :  { %v94_v32 = vmul.f32 %v2413_v25, %v88_v30  ;;  %2528 = vmatprep.mubr.msk.f32.mxu0 %vm61_vm0, %v99_v31  ;;  %2614 = vmatprep.subr.bf16.mxu1 %v3167_v10  ;;  %v45_v25 = vld [vmem:[%s3583_s3 + $0x78] sm:$0xff]  ;;  %v3232_v31 = vpack.c.bf16 %v44_v29, %v42_v28 }
 0x13c   :  { %2630 = vmatprep.subr.bf16.mxu0 %v3167_v10  ;;  %2616 = vmatpush1.bf16.msra.mxu1 %v3178_v14 }
 0x13d   :  { %v100_v33 = vadd.f32 %v2414_v27, %v94_v32  ;;  %2618 = vmatprep.subr.bf16.mxu1 %v3180_v15  ;;  %v3221_v27 = vpack.c.bf16 %v45_v25, %v43_v24  ;;  %v3044_v32 = vmov 0.0  }
 0x13e   :  { %326 = vmatprep.mubr.f32.mxu1 %v3044_v32 }
 0x13f   :  { %2529 = vmatmul.mubr.msk.f32.vlgmr.msra.gmra.mrb[0].mxu0 %vm61_vm0, %v100_v33 }
 0x140   :  { %2632 = vmatpush1.bf16.msra.mxu0 %v3178_v14  ;;  %2620 = vmatpush1.bf16.msra.mxu1 %v3197_v20 }
 0x141   :  { %2634 = vmatprep.subr.bf16.mxu0 %v3180_v15  ;;  %2622 = vmatprep.subr.bf16.mxu1 %v3201_v21 }
 0x142   :  { %463 = vmatprep.mubr.f32.mxu0 %v3044_v32 }
 0x144   :  { %2636 = vmatpush1.bf16.msra.mxu0 %v3197_v20  ;;  %2624 = vmatpush1.bf16.msra.mxu1 %v3217_v26 }
 0x145   :  { %2638 = vmatprep.subr.bf16.mxu0 %v3201_v21  ;;  %2626 = vmatprep.subr.bf16.mxu1 %v3221_v27 }
 0x148   :  { %2640 = vmatpush1.bf16.msra.mxu0 %v3217_v26  ;;  %2628 = vmatpush1.bf16.msra.mxu1 %v3232_v31 }
 0x149   :  { %2642 = vmatprep.subr.bf16.mxu0 %v3221_v27  ;;  %2646 = vmatprep.subr.bf16.mxu1 %v3167_v10 }
 0x14c   :  { %2644 = vmatpush1.bf16.msra.mxu0 %v3232_v31 }
 0x14d   :  { %2662 = vmatprep.subr.bf16.mxu0 %v3167_v10 }
 0x212   :  { %v2530_v35 = vpop.f32.mrb[0].mxu0 }
 0x213   :  { %v187_v36 = vadd.f32 %v2530_v35, %v2415_v34  ;;  %v181_v37 = vpop.f32.mrb[1].mxu0 }
 0x214   :  { %v182_v38 = vadd.f32 %v2415_v34, %v181_v37  ;;  %v3258_v37 = vld [vmem:[%s3586_s6 + $0x1] ss:$0 sm:$0xff] }
 0x215   :  { %v191_v39 = vrot.slane %v187_v36, 7  ;;  %v200_v40 = vrot.slane %v187_v36, 1  ;;  %v205_v41 = vrot.slane %v187_v36, 2  ;;  %v210_v42 = vrot.slane %v187_v36, 3 }
 0x216   :  { %v195_v43 = vrot.slane %v182_v38, 1  ;;  %v198_v44 = vrot.slane %v182_v38, 2  ;;  %v203_v45 = vrot.slane %v182_v38, 3  ;;  %v208_v46 = vrot.slane %v182_v38, 4 }
 0x217   :  { %v193_v47 = vsel %vm111_vm1, %v182_v38, %v191_v39  ;;  %v213_v48 = vrot.slane %v182_v38, 5  ;;  %v215_v49 = vrot.slane %v187_v36, 4  ;;  %v218_v50 = vrot.slane %v182_v38, 6 }
 0x218   :  { %2858 = vtanh.f32 %v193_v47  ;;  %v3133_v51 = vsel %vm111_vm1, %v195_v43, %v187_v36  ;;  %v3136_v52 = vsel %vm111_vm1, %v198_v44, %v200_v40  ;;  %v3139_v53 = vsel %vm111_vm1, %v203_v45, %v205_v41 }
 0x219   :  { %v3142_v54 = vsel %vm111_vm1, %v208_v46, %v210_v42  ;;  %v3145_v55 = vsel %vm111_vm1, %v213_v48, %v215_v49  ;;  %v220_v56 = vrot.slane %v187_v36, 5  ;;  %v223_v57 = vrot.slane %v182_v38, 7 }
 0x21a   :  { %v225_v58 = vrot.slane %v187_v36, 6  ;;  %v2419_v62 = vmul.f32 -1.442695, %v193_v47 }
 0x21b   :  { %v3148_v59 = vsel %vm111_vm1, %v218_v50, %v220_v56 }
 0x21c   :  { %v3151_v60 = vsel %vm111_vm1, %v223_v57, %v225_v58  ;;  %2860 = vpow2.f32 %v2419_v62 }
 0x222   :  { %v2859_v61 = vpop.eup %2858 }
 0x223   :  { %237 = vrot.lane.b32.xlu0 %v2859_v61, %s3042_s1 }
 0x226   :  { %v2861_v63 = vpop.eup %2860 }
 0x227   :  { %v231_v0 = vadd.f32 1.0, %v2861_v63 }
 0x229   :  { %2862 = vrcp.f32 %v231_v0 }
 0x233   :  { %v2863_v1 = vpop.eup %2862 }
 0x234   :  { %v235_v4 = vmul.f32 0.0, %v2863_v1 }
 0x295   :  { %v238_v2 = vpop.permute.xlu0 %237 }
 0x296   :  { %v240_v3 = vmul.f32 %v2863_v1, %v238_v2 }
 0x298   :  { %242 = vrot.lane.b32.xlu1 %v240_v3, %s3043_s15 }
 0x30a   :  { %v243_v5 = vpop.permute.xlu1 %242 }
 0x30b   :  { %v3155_v6 = vadd.f32 %v243_v5, %v235_v4 }
 0x30d   :  { %2864 = vtanh.f32 %v3155_v6 }
 0x317   :  { %v2865_v30 = vpop.eup %2864 }
 0x318   :  { %248 = vrot.lane.b32.xlu1 %v2865_v30, %s3042_s1 }
 0x38a   :  { %v249_v33 = vpop.permute.xlu1 %248 }
 0x38b   :  { %v251_v34 = vmul.f32 %v2863_v1, %v249_v33 }
 0x38d   :  { %253 = vrot.lane.b32.xlu1 %v251_v34, %s3043_s15 }
 0x3ff   :  { %v254_v35 = vpop.permute.xlu1 %253 }
 0x400   :  { %v257_v36 = vsel %vm256_vm2, %v254_v35, 0.0 }
 0x401   :  { %2420 = vmatmul.mubr.msk.f32.vlgmr.msra.gmra.mrb[0].mxu1 %vm258_vm3, %v257_v36 }
 0x402   :  { %2648 = vmatpush1.bf16.msra.mxu1 %v3178_v14  ;;  %596 = vmatprep.mubr.f32.mxu1 %v3044_v32 }
 0x403   :  { %2650 = vmatprep.subr.bf16.mxu1 %v3180_v15 }
 0x406   :  { %2652 = vmatpush1.bf16.msra.mxu1 %v3197_v20 }
 0x407   :  { %2654 = vmatprep.subr.bf16.mxu1 %v3201_v21 }
 0x40a   :  { %2656 = vmatpush1.bf16.msra.mxu1 %v3217_v26 }
 0x40b   :  { %2658 = vmatprep.subr.bf16.mxu1 %v3221_v27 }
 0x40e   :  { %2660 = vmatpush1.bf16.msra.mxu1 %v3232_v31 }
 0x40f   :  { %2678 = vmatprep.subr.bf16.mxu1 %v3167_v10 }
 0x4d4   :  { %v328_v38 = vpop.f32.mrb[0].mxu1 }
 0x4d5   :  { %v338_v39 = vadd.f32 %v328_v38, %v3133_v51  ;;  %v330_v40 = vpop.f32.mrb[1].mxu1 }
 0x4d6   :  { %v337_v41 = vadd.f32 %v3258_v37, %v330_v40 }
 0x4d7   :  { %2866 = vtanh.f32 %v338_v39  ;;  %v2423_v44 = vmul.f32 -1.442695, %v338_v39 }
 0x4d8   :  { %2868 = vtanh.f32 %v337_v41  ;;  %v2422_v45 = vmul.f32 -1.442695, %v337_v41 }
 0x4d9   :  { %2870 = vpow2.f32 %v2423_v44 }
 0x4da   :  { %2872 = vpow2.f32 %v2422_v45 }
 0x4e1   :  { %v2867_v42 = vpop.eup %2866 }
 0x4e2   :  { %v2869_v43 = vpop.eup %2868  ;;  %372 = vrot.lane.b32.xlu1 %v2867_v42, %s3042_s1 }
 0x4e3   :  { %348 = vrot.lane.b32.xlu0 %v2869_v43, %s3042_s1  ;;  %v2871_v46 = vpop.eup %2870 }
 0x4e4   :  { %v2873_v47 = vpop.eup %2872  ;;  %v366_v48 = vadd.f32 1.0, %v2871_v46 }
 0x4e5   :  { %v342_v49 = vadd.f32 1.0, %v2873_v47 }
 0x4e6   :  { %2874 = vrcp.f32 %v366_v48 }
 0x4e7   :  { %2876 = vrcp.f32 %v342_v49 }
 0x4f0   :  { %v2875_v50 = vpop.eup %2874 }
 0x4f1   :  { %v2877_v56 = vpop.eup %2876  ;;  %v370_v62 = vmul.f32 %v2875_v50, %v3155_v6 }
 0x4f2   :  { %v346_v0 = vmul.f32 0.0, %v2877_v56 }
 0x554   :  { %v373_v51 = vpop.permute.xlu1 %372 }
 0x555   :  { %v375_v57 = vmul.f32 %v2875_v50, %v373_v51  ;;  %v349_v58 = vpop.permute.xlu0 %348 }
 0x556   :  { %v351_v61 = vmul.f32 %v2877_v56, %v349_v58 }
 0x557   :  { %377 = vrot.lane.b32.xlu1 %v375_v57, %s3043_s15 }
 0x558   :  { %353 = vrot.lane.b32.xlu0 %v351_v61, %s3043_s15 }
 0x5c9   :  { %v378_v63 = vpop.permute.xlu1 %377 }
 0x5ca   :  { %v380_v1 = vadd.f32 %v378_v63, %v370_v62  ;;  %v354_v2 = vpop.permute.xlu0 %353 }
 0x5cb   :  { %v356_v3 = vadd.f32 %v354_v2, %v346_v0 }
 0x5cc   :  { %2878 = vtanh.f32 %v380_v1 }
 0x5cd   :  { %2880 = vtanh.f32 %v356_v3 }
 0x5d6   :  { %v2879_v4 = vpop.eup %2878 }
 0x5d7   :  { %v2881_v5 = vpop.eup %2880  ;;  %383 = vrot.lane.b32.xlu1 %v2879_v4, %s3042_s1 }
 0x5d8   :  { %359 = vrot.lane.b32.xlu0 %v2881_v5, %s3042_s1 }
 0x649   :  { %v384_v7 = vpop.permute.xlu1 %383 }
 0x64a   :  { %v386_v8 = vmul.f32 %v2875_v50, %v384_v7  ;;  %v360_v9 = vpop.permute.xlu0 %359 }
 0x64b   :  { %v3269_v11 = vmul.f32 %v2877_v56, %v360_v9 }
 0x64c   :  { %388 = vrot.lane.b32.xlu0 %v386_v8, %s3043_s15 }
 0x64d   :  { %392 = vrot.lane.b32.xlu1 %v3269_v11, %s3042_s1 }
 0x6be   :  { %v389_v6 = vpop.permute.xlu0 %388 }
 0x6bf   :  { %v393_v12 = vpop.permute.xlu1 %392 }
 0x6c0   :  { %v395_v13 = vsel %vm256_vm2, %v389_v6, %v393_v12 }
 0x6c1   :  { %2424 = vmatmul.mubr.msk.f32.vlgmr.msra.gmra.mrb[2].mxu0 %vm258_vm3, %v395_v13 }
 0x6c2   :  { %2664 = vmatpush1.bf16.msra.mxu0 %v3178_v14  ;;  %729 = vmatprep.mubr.f32.mxu0 %v3044_v32 }
 0x6c3   :  { %2666 = vmatprep.subr.bf16.mxu0 %v3180_v15 }
 0x6c6   :  { %2668 = vmatpush1.bf16.msra.mxu0 %v3197_v20 }
 0x6c7   :  { %2670 = vmatprep.subr.bf16.mxu0 %v3201_v21 }
 0x6ca   :  { %2672 = vmatpush1.bf16.msra.mxu0 %v3217_v26 }
 0x6cb   :  { %2674 = vmatprep.subr.bf16.mxu0 %v3221_v27 }
 0x6ce   :  { %2676 = vmatpush1.bf16.msra.mxu0 %v3232_v31 }
 0x6cf   :  { %2694 = vmatprep.subr.bf16.mxu0 %v3167_v10 }
 0x794   :  { %v465_v16 = vpop.f32.mrb[2].mxu0 }
 0x795   :  { %v471_v17 = vadd.f32 %v465_v16, %v3136_v52  ;;  %v467_v18 = vpop.f32.mrb[3].mxu0 }
 0x796   :  { %v470_v19 = vadd.f32 %v3258_v37, %v467_v18 }
 0x797   :  { %2882 = vtanh.f32 %v471_v17  ;;  %v2426_v24 = vmul.f32 -1.442695, %v471_v17 }
 0x798   :  { %2884 = vtanh.f32 %v470_v19  ;;  %v2425_v25 = vmul.f32 -1.442695, %v470_v19 }
 0x799   :  { %2886 = vpow2.f32 %v2426_v24 }
 0x79a   :  { %2888 = vpow2.f32 %v2425_v25 }
 0x7a1   :  { %v2883_v22 = vpop.eup %2882 }
 0x7a2   :  { %v2885_v23 = vpop.eup %2884  ;;  %505 = vrot.lane.b32.xlu1 %v2883_v22, %s3042_s1 }
 0x7a3   :  { %481 = vrot.lane.b32.xlu0 %v2885_v23, %s3042_s1  ;;  %v2887_v28 = vpop.eup %2886 }
 0x7a4   :  { %v2889_v29 = vpop.eup %2888  ;;  %v499_v30 = vadd.f32 1.0, %v2887_v28 }
 0x7a5   :  { %v475_v33 = vadd.f32 1.0, %v2889_v29 }
 0x7a6   :  { %2890 = vrcp.f32 %v499_v30 }
 0x7a7   :  { %2892 = vrcp.f32 %v475_v33 }
 0x7b0   :  { %v2891_v52 = vpop.eup %2890 }
 0x7b1   :  { %v2893_v35 = vpop.eup %2892  ;;  %v503_v40 = vmul.f32 %v2891_v52, %v380_v1 }
 0x7b2   :  { %v479_v42 = vmul.f32 %v2893_v35, %v356_v3 }
 0x814   :  { %v506_v34 = vpop.permute.xlu1 %505 }
 0x815   :  { %v508_v36 = vmul.f32 %v2891_v52, %v506_v34  ;;  %v482_v38 = vpop.permute.xlu0 %481 }
 0x816   :  { %v484_v39 = vmul.f32 %v2893_v35, %v482_v38 }
 0x817   :  { %510 = vrot.lane.b32.xlu1 %v508_v36, %s3043_s15 }
 0x818   :  { %486 = vrot.lane.b32.xlu0 %v484_v39, %s3043_s15 }
 0x889   :  { %v511_v41 = vpop.permute.xlu1 %510 }
 0x88a   :  { %v513_v43 = vadd.f32 %v511_v41, %v503_v40  ;;  %v487_v44 = vpop.permute.xlu0 %486 }
 0x88b   :  { %v489_v45 = vadd.f32 %v487_v44, %v479_v42 }
 0x88c   :  { %2894 = vtanh.f32 %v513_v43 }
 0x88d   :  { %2896 = vtanh.f32 %v489_v45 }
 0x896   :  { %v2895_v46 = vpop.eup %2894 }
 0x897   :  { %v2897_v47 = vpop.eup %2896  ;;  %516 = vrot.lane.b32.xlu1 %v2895_v46, %s3042_s1 }
 0x898   :  { %492 = vrot.lane.b32.xlu0 %v2897_v47, %s3042_s1 }
 0x909   :  { %v517_v48 = vpop.permute.xlu1 %516 }
 0x90a   :  { %v519_v49 = vmul.f32 %v2891_v52, %v517_v48  ;;  %v493_v50 = vpop.permute.xlu0 %492 }
 0x90b   :  { %v3293_v51 = vmul.f32 %v2893_v35, %v493_v50 }
 0x90c   :  { %521 = vrot.lane.b32.xlu0 %v519_v49, %s3043_s15 }
 0x90d   :  { %525 = vrot.lane.b32.xlu1 %v3293_v51, %s3042_s1  ;;  %v1292_v33 = vrot.slane %v3293_v51, 6 }
 0x90f   :  { %v1306_v38 = vsel %vm1305_vm4, %v3269_v11, %v1292_v33 }
 0x97e   :  { %v522_v56 = vpop.permute.xlu0 %521 }
 0x97f   :  { %v526_v57 = vpop.permute.xlu1 %525 }
 0x980   :  { %v528_v58 = vsel %vm256_vm2, %v522_v56, %v526_v57 }
 0x981   :  { %2427 = vmatmul.mubr.msk.f32.vlgmr.msra.gmra.mrb[2].mxu1 %vm258_vm3, %v528_v58 }
 0x982   :  { %2680 = vmatpush1.bf16.msra.mxu1 %v3178_v14  ;;  %862 = vmatprep.mubr.f32.mxu1 %v3044_v32 }
 0x983   :  { %2682 = vmatprep.subr.bf16.mxu1 %v3180_v15 }
 0x986   :  { %2684 = vmatpush1.bf16.msra.mxu1 %v3197_v20 }
 0x987   :  { %2686 = vmatprep.subr.bf16.mxu1 %v3201_v21 }
 0x98a   :  { %2688 = vmatpush1.bf16.msra.mxu1 %v3217_v26 }
 0x98b   :  { %2690 = vmatprep.subr.bf16.mxu1 %v3221_v27 }
 0x98e   :  { %2692 = vmatpush1.bf16.msra.mxu1 %v3232_v31 }
 0x98f   :  { %2710 = vmatprep.subr.bf16.mxu1 %v3167_v10 }
 0xa54   :  { %v598_v61 = vpop.f32.mrb[2].mxu1 }
 0xa55   :  { %v604_v62 = vadd.f32 %v598_v61, %v3139_v53  ;;  %v600_v63 = vpop.f32.mrb[3].mxu1 }
 0xa56   :  { %v603_v0 = vadd.f32 %v3258_v37, %v600_v63 }
 0xa57   :  { %2898 = vtanh.f32 %v604_v62  ;;  %v2429_v3 = vmul.f32 -1.442695, %v604_v62 }
 0xa58   :  { %2900 = vtanh.f32 %v603_v0  ;;  %v2428_v4 = vmul.f32 -1.442695, %v603_v0 }
 0xa59   :  { %2902 = vpow2.f32 %v2429_v3 }
 0xa5a   :  { %2904 = vpow2.f32 %v2428_v4 }
 0xa61   :  { %v2899_v1 = vpop.eup %2898 }
 0xa62   :  { %v2901_v2 = vpop.eup %2900  ;;  %638 = vrot.lane.b32.xlu1 %v2899_v1, %s3042_s1 }
 0xa63   :  { %614 = vrot.lane.b32.xlu0 %v2901_v2, %s3042_s1  ;;  %v2903_v5 = vpop.eup %2902 }
 0xa64   :  { %v2905_v7 = vpop.eup %2904  ;;  %v632_v8 = vadd.f32 1.0, %v2903_v5 }
 0xa65   :  { %v608_v9 = vadd.f32 1.0, %v2905_v7 }
 0xa66   :  { %2906 = vrcp.f32 %v632_v8 }
 0xa67   :  { %2908 = vrcp.f32 %v608_v9 }
 0xa70   :  { %v2907_v53 = vpop.eup %2906 }
 0xa71   :  { %v2909_v12 = vpop.eup %2908  ;;  %v636_v18 = vmul.f32 %v2907_v53, %v513_v43 }
 0xa72   :  { %v612_v22 = vmul.f32 %v2909_v12, %v489_v45 }
 0xad4   :  { %v639_v6 = vpop.permute.xlu1 %638 }
 0xad5   :  { %v641_v13 = vmul.f32 %v2907_v53, %v639_v6  ;;  %v615_v16 = vpop.permute.xlu0 %614 }
 0xad6   :  { %v617_v17 = vmul.f32 %v2909_v12, %v615_v16 }
 0xad7   :  { %643 = vrot.lane.b32.xlu1 %v641_v13, %s3043_s15 }
 0xad8   :  { %619 = vrot.lane.b32.xlu0 %v617_v17, %s3043_s15 }
 0xb49   :  { %v644_v19 = vpop.permute.xlu1 %643 }
 0xb4a   :  { %v646_v23 = vadd.f32 %v644_v19, %v636_v18  ;;  %v620_v24 = vpop.permute.xlu0 %619 }
 0xb4b   :  { %v622_v25 = vadd.f32 %v620_v24, %v612_v22 }
 0xb4c   :  { %2910 = vtanh.f32 %v646_v23 }
 0xb4d   :  { %2912 = vtanh.f32 %v622_v25 }
 0xb56   :  { %v2911_v28 = vpop.eup %2910 }
 0xb57   :  { %v2913_v29 = vpop.eup %2912  ;;  %649 = vrot.lane.b32.xlu1 %v2911_v28, %s3042_s1 }
 0xb58   :  { %625 = vrot.lane.b32.xlu0 %v2913_v29, %s3042_s1 }
 0xbc9   :  { %v650_v30 = vpop.permute.xlu1 %649 }
 0xbca   :  { %v652_v52 = vmul.f32 %v2907_v53, %v650_v30  ;;  %v626_v34 = vpop.permute.xlu0 %625 }
 0xbcb   :  { %v628_v35 = vmul.f32 %v2909_v12, %v626_v34 }
 0xbcc   :  { %654 = vrot.lane.b32.xlu0 %v652_v52, %s3043_s15 }
 0xbcd   :  { %v1294_v36 = vrot.slane %v628_v35, 4  ;;  %658 = vrot.lane.b32.xlu1 %v628_v35, %s3042_s1 }
 0xbcf   :  { %v3323_v39 = vsel %vm1307_vm5, %v1306_v38, %v1294_v36 }
 0xc3e   :  { %v655_v40 = vpop.permute.xlu0 %654 }
 0xc3f   :  { %v659_v41 = vpop.permute.xlu1 %658 }
 0xc40   :  { %v661_v42 = vsel %vm256_vm2, %v655_v40, %v659_v41 }
 0xc41   :  { %2430 = vmatmul.mubr.msk.f32.vlgmr.msra.gmra.mrb[4].mxu0 %vm258_vm3, %v661_v42 }
 0xc42   :  { %2696 = vmatpush1.bf16.msra.mxu0 %v3178_v14  ;;  %995 = vmatprep.mubr.f32.mxu0 %v3044_v32 }
 0xc43   :  { %2698 = vmatprep.subr.bf16.mxu0 %v3180_v15 }
 0xc46   :  { %2700 = vmatpush1.bf16.msra.mxu0 %v3197_v20 }
 0xc47   :  { %2702 = vmatprep.subr.bf16.mxu0 %v3201_v21 }
 0xc4a   :  { %2704 = vmatpush1.bf16.msra.mxu0 %v3217_v26 }
 0xc4b   :  { %2706 = vmatprep.subr.bf16.mxu0 %v3221_v27 }
 0xc4e   :  { %2708 = vmatpush1.bf16.msra.mxu0 %v3232_v31 }
 0xc4f   :  { %2726 = vmatprep.subr.bf16.mxu0 %v3167_v10 }
 0xd14   :  { %v731_v11 = vpop.f32.mrb[4].mxu0 }
 0xd15   :  { %v737_v43 = vadd.f32 %v731_v11, %v3142_v54  ;;  %v733_v44 = vpop.f32.mrb[5].mxu0 }
 0xd16   :  { %v736_v45 = vadd.f32 %v3258_v37, %v733_v44 }
 0xd17   :  { %2914 = vtanh.f32 %v737_v43  ;;  %v2432_v48 = vmul.f32 -1.442695, %v737_v43 }
 0xd18   :  { %2916 = vtanh.f32 %v736_v45  ;;  %v2431_v49 = vmul.f32 -1.442695, %v736_v45 }
 0xd19   :  { %2918 = vpow2.f32 %v2432_v48 }
 0xd1a   :  { %2920 = vpow2.f32 %v2431_v49 }
 0xd21   :  { %v2915_v46 = vpop.eup %2914 }
 0xd22   :  { %v2917_v47 = vpop.eup %2916  ;;  %771 = vrot.lane.b32.xlu1 %v2915_v46, %s3042_s1 }
 0xd23   :  { %747 = vrot.lane.b32.xlu0 %v2917_v47, %s3042_s1  ;;  %v2919_v50 = vpop.eup %2918 }
 0xd24   :  { %v2921_v10 = vpop.eup %2920  ;;  %v765_v51 = vadd.f32 1.0, %v2919_v50 }
 0xd25   :  { %v741_v56 = vadd.f32 1.0, %v2921_v10 }
 0xd26   :  { %2922 = vrcp.f32 %v765_v51 }
 0xd27   :  { %2924 = vrcp.f32 %v741_v56 }
 0xd30   :  { %v2923_v54 = vpop.eup %2922 }
 0xd31   :  { %v2925_v58 = vpop.eup %2924  ;;  %v769_v0 = vmul.f32 %v2923_v54, %v646_v23 }
 0xd32   :  { %v745_v2 = vmul.f32 %v2925_v58, %v622_v25 }
 0xd94   :  { %v772_v57 = vpop.permute.xlu1 %771 }
 0xd95   :  { %v774_v61 = vmul.f32 %v2923_v54, %v772_v57  ;;  %v748_v62 = vpop.permute.xlu0 %747 }
 0xd96   :  { %v750_v63 = vmul.f32 %v2925_v58, %v748_v62 }
 0xd97   :  { %776 = vrot.lane.b32.xlu1 %v774_v61, %s3043_s15 }
 0xd98   :  { %752 = vrot.lane.b32.xlu0 %v750_v63, %s3043_s15 }
 0xe09   :  { %v777_v1 = vpop.permute.xlu1 %776 }
 0xe0a   :  { %v779_v3 = vadd.f32 %v777_v1, %v769_v0  ;;  %v753_v4 = vpop.permute.xlu0 %752 }
 0xe0b   :  { %v755_v5 = vadd.f32 %v753_v4, %v745_v2 }
 0xe0c   :  { %2926 = vtanh.f32 %v779_v3 }
 0xe0d   :  { %2928 = vtanh.f32 %v755_v5 }
 0xe16   :  { %v2927_v7 = vpop.eup %2926 }
 0xe17   :  { %v2929_v8 = vpop.eup %2928  ;;  %782 = vrot.lane.b32.xlu1 %v2927_v7, %s3042_s1 }
 0xe18   :  { %758 = vrot.lane.b32.xlu0 %v2929_v8, %s3042_s1 }
 0xe89   :  { %v783_v9 = vpop.permute.xlu1 %782 }
 0xe8a   :  { %v785_v53 = vmul.f32 %v2923_v54, %v783_v9  ;;  %v759_v6 = vpop.permute.xlu0 %758 }
 0xe8b   :  { %v761_v12 = vmul.f32 %v2925_v58, %v759_v6 }
 0xe8c   :  { %787 = vrot.lane.b32.xlu0 %v785_v53, %s3043_s15 }
 0xe8d   :  { %v1296_v13 = vrot.slane %v761_v12, 2  ;;  %791 = vrot.lane.b32.xlu1 %v761_v12, %s3042_s1 }
 0xe8f   :  { %v3348_v16 = vsel %vm1309_vm6, %v3323_v39, %v1296_v13 }
 0xefe   :  { %v788_v17 = vpop.permute.xlu0 %787 }
 0xeff   :  { %v792_v18 = vpop.permute.xlu1 %791 }
 0xf00   :  { %v794_v19 = vsel %vm256_vm2, %v788_v17, %v792_v18 }
 0xf01   :  { %2433 = vmatmul.mubr.msk.f32.vlgmr.msra.gmra.mrb[4].mxu1 %vm258_vm3, %v794_v19 }
 0xf02   :  { %2712 = vmatpush1.bf16.msra.mxu1 %v3178_v14  ;;  %1128 = vmatprep.mubr.f32.mxu1 %v3044_v32 }
 0xf03   :  { %2714 = vmatprep.subr.bf16.mxu1 %v3180_v15 }
 0xf06   :  { %2716 = vmatpush1.bf16.msra.mxu1 %v3197_v20 }
 0xf07   :  { %2718 = vmatprep.subr.bf16.mxu1 %v3201_v21 }
 0xf0a   :  { %2720 = vmatpush1.bf16.msra.mxu1 %v3217_v26 }
 0xf0b   :  { %2722 = vmatprep.subr.bf16.mxu1 %v3221_v27 }
 0xf0e   :  { %2724 = vmatpush1.bf16.msra.mxu1 %v3232_v31 }
 0xfd4   :  { %v864_v22 = vpop.f32.mrb[4].mxu1 }
 0xfd5   :  { %v870_v23 = vadd.f32 %v864_v22, %v3145_v55  ;;  %v866_v24 = vpop.f32.mrb[5].mxu1 }
 0xfd6   :  { %v869_v25 = vadd.f32 %v3258_v37, %v866_v24 }
 0xfd7   :  { %2930 = vtanh.f32 %v870_v23  ;;  %v2435_v30 = vmul.f32 -1.442695, %v870_v23 }
 0xfd8   :  { %2932 = vtanh.f32 %v869_v25  ;;  %v2434_v33 = vmul.f32 -1.442695, %v869_v25 }
 0xfd9   :  { %2934 = vpow2.f32 %v2435_v30 }
 0xfda   :  { %2936 = vpow2.f32 %v2434_v33 }
 0xfe1   :  { %v2931_v28 = vpop.eup %2930 }
 0xfe2   :  { %v2933_v29 = vpop.eup %2932  ;;  %904 = vrot.lane.b32.xlu1 %v2931_v28, %s3042_s1 }
 0xfe3   :  { %880 = vrot.lane.b32.xlu0 %v2933_v29, %s3042_s1  ;;  %v2935_v52 = vpop.eup %2934 }
 0xfe4   :  { %v2937_v34 = vpop.eup %2936  ;;  %v898_v35 = vadd.f32 1.0, %v2935_v52 }
 0xfe5   :  { %v874_v36 = vadd.f32 1.0, %v2937_v34 }
 0xfe6   :  { %2938 = vrcp.f32 %v898_v35 }
 0xfe7   :  { %2940 = vrcp.f32 %v874_v36 }
 0xff0   :  { %v2939_v55 = vpop.eup %2938 }
 0xff1   :  { %v2941_v39 = vpop.eup %2940  ;;  %v902_v11 = vmul.f32 %v2939_v55, %v779_v3 }
 0xff2   :  { %v878_v44 = vmul.f32 %v2941_v39, %v755_v5 }
0x1054   :  { %v905_v38 = vpop.permute.xlu1 %904 }
0x1055   :  { %v907_v40 = vmul.f32 %v2939_v55, %v905_v38  ;;  %v881_v41 = vpop.permute.xlu0 %880 }
0x1056   :  { %v883_v42 = vmul.f32 %v2941_v39, %v881_v41 }
0x1057   :  { %909 = vrot.lane.b32.xlu1 %v907_v40, %s3043_s15 }
0x1058   :  { %885 = vrot.lane.b32.xlu0 %v883_v42, %s3043_s15 }
0x10c9   :  { %v910_v43 = vpop.permute.xlu1 %909 }
0x10ca   :  { %v912_v45 = vadd.f32 %v910_v43, %v902_v11  ;;  %v886_v46 = vpop.permute.xlu0 %885 }
0x10cb   :  { %v888_v47 = vadd.f32 %v886_v46, %v878_v44 }
0x10cc   :  { %2942 = vtanh.f32 %v912_v45 }
0x10cd   :  { %2944 = vtanh.f32 %v888_v47 }
0x10d6   :  { %v2943_v48 = vpop.eup %2942 }
0x10d7   :  { %v2945_v49 = vpop.eup %2944  ;;  %915 = vrot.lane.b32.xlu1 %v2943_v48, %s3042_s1 }
0x10d8   :  { %891 = vrot.lane.b32.xlu0 %v2945_v49, %s3042_s1 }
0x1149   :  { %v916_v50 = vpop.permute.xlu1 %915 }
0x114a   :  { %v918_v10 = vmul.f32 %v2939_v55, %v916_v50  ;;  %v892_v51 = vpop.permute.xlu0 %891 }
0x114b   :  { %v3368_v56 = vmul.f32 %v2941_v39, %v892_v51 }
0x114c   :  { %920 = vrot.lane.b32.xlu0 %v918_v10, %s3043_s15 }
0x114d   :  { %924 = vrot.lane.b32.xlu1 %v3368_v56, %s3042_s1 }
0x11be   :  { %v921_v54 = vpop.permute.xlu0 %920 }
0x11bf   :  { %v925_v57 = vpop.permute.xlu1 %924 }
0x11c0   :  { %v927_v58 = vsel %vm256_vm2, %v921_v54, %v925_v57 }
0x11c1   :  { %2436 = vmatmul.mubr.msk.f32.vlgmr.msra.gmra.mrb[6].mxu0 %vm258_vm3, %v927_v58 }
0x11c2   :  { %2728 = vmatpush1.bf16.msra.mxu0 %v3178_v14  ;;  %1261 = vmatprep.mubr.f32.mxu0 %v3044_v32 }
0x11c3   :  { %2730 = vmatprep.subr.bf16.mxu0 %v3180_v15 }
0x11c6   :  { %2732 = vmatpush1.bf16.msra.mxu0 %v3197_v20 }
0x11c7   :  { %2734 = vmatprep.subr.bf16.mxu0 %v3201_v21 }
0x11ca   :  { %2736 = vmatpush1.bf16.msra.mxu0 %v3217_v26 }
0x11cb   :  { %2738 = vmatprep.subr.bf16.mxu0 %v3221_v27 }
0x11ce   :  { %2740 = vmatpush1.bf16.msra.mxu0 %v3232_v31 }
0x1294   :  { %v997_v61 = vpop.f32.mrb[6].mxu0 }
0x1295   :  { %v1003_v62 = vadd.f32 %v997_v61, %v3148_v59  ;;  %v999_v63 = vpop.f32.mrb[7].mxu0 }
0x1296   :  { %v1002_v14 = vadd.f32 %v3258_v37, %v999_v63 }
0x1297   :  { %2946 = vtanh.f32 %v1003_v62  ;;  %v2438_v20 = vmul.f32 -1.442695, %v1003_v62 }
0x1298   :  { %2948 = vtanh.f32 %v1002_v14  ;;  %v2437_v21 = vmul.f32 -1.442695, %v1002_v14 }
0x1299   :  { %2950 = vpow2.f32 %v2438_v20 }
0x129a   :  { %2952 = vpow2.f32 %v2437_v21 }
0x12a1   :  { %v2947_v32 = vpop.eup %2946 }
0x12a2   :  { %v2949_v15 = vpop.eup %2948  ;;  %1037 = vrot.lane.b32.xlu1 %v2947_v32, %s3042_s1 }
0x12a3   :  { %1013 = vrot.lane.b32.xlu0 %v2949_v15, %s3042_s1  ;;  %v2951_v26 = vpop.eup %2950 }
0x12a4   :  { %v2953_v27 = vpop.eup %2952  ;;  %v1031_v31 = vadd.f32 1.0, %v2951_v26 }
0x12a5   :  { %v1007_v0 = vadd.f32 1.0, %v2953_v27 }
0x12a6   :  { %2954 = vrcp.f32 %v1031_v31 }
0x12a7   :  { %2956 = vrcp.f32 %v1007_v0 }
0x12b0   :  { %v2955_v59 = vpop.eup %2954 }
0x12b1   :  { %v2957_v2 = vpop.eup %2956  ;;  %v1035_v7 = vmul.f32 %v2955_v59, %v912_v45 }
0x12b2   :  { %v1011_v9 = vmul.f32 %v2957_v2, %v888_v47 }
0x1314   :  { %v1038_v1 = vpop.permute.xlu1 %1037 }
0x1315   :  { %v1040_v3 = vmul.f32 %v2955_v59, %v1038_v1  ;;  %v1014_v4 = vpop.permute.xlu0 %1013 }
0x1316   :  { %v1016_v5 = vmul.f32 %v2957_v2, %v1014_v4 }
0x1317   :  { %1042 = vrot.lane.b32.xlu1 %v1040_v3, %s3043_s15 }
0x1318   :  { %1018 = vrot.lane.b32.xlu0 %v1016_v5, %s3043_s15 }
0x1389   :  { %v1043_v8 = vpop.permute.xlu1 %1042 }
0x138a   :  { %v1045_v53 = vadd.f32 %v1043_v8, %v1035_v7  ;;  %v1019_v6 = vpop.permute.xlu0 %1018 }
0x138b   :  { %v1021_v12 = vadd.f32 %v1019_v6, %v1011_v9  ;;  %v47_v6 = vld [vmem:[%s3584_s4 + $0x8] sm:$0xff] }
0x138c   :  { %2958 = vtanh.f32 %v1045_v53 }
0x138d   :  { %2960 = vtanh.f32 %v1021_v12 }
0x1396   :  { %v2959_v13 = vpop.eup %2958 }
0x1397   :  { %v2961_v17 = vpop.eup %2960  ;;  %1048 = vrot.lane.b32.xlu1 %v2959_v13, %s3042_s1  ;;  %v49_v13 = vld [vmem:[%s3584_s4 + $0x18] sm:$0xff] }
0x1398   :  { %1024 = vrot.lane.b32.xlu0 %v2961_v17, %s3042_s1 }
0x1409   :  { %v1049_v18 = vpop.permute.xlu1 %1048 }
0x140a   :  { %v1051_v19 = vmul.f32 %v2955_v59, %v1049_v18  ;;  %v1025_v22 = vpop.permute.xlu0 %1024 }
0x140b   :  { %v1027_v23 = vmul.f32 %v2957_v2, %v1025_v22 }
0x140c   :  { %1053 = vrot.lane.b32.xlu0 %v1051_v19, %s3043_s15 }
0x140d   :  { %1057 = vrot.lane.b32.xlu1 %v1027_v23, %s3042_s1  ;;  %v1298_v58 = vrot.slane %v1027_v23, 6 }
0x140f   :  { %v1311_v32 = vsel %vm1305_vm4, %v3368_v56, %v1298_v58 }
0x147e   :  { %v1054_v24 = vpop.permute.xlu0 %1053 }
0x147f   :  { %v1058_v25 = vpop.permute.xlu1 %1057 }
0x1480   :  { %v1060_v28 = vsel %vm256_vm2, %v1054_v24, %v1058_v25 }
0x1481   :  { %2439 = vmatmul.mubr.msk.f32.vlgmr.msra.gmra.mrb[6].mxu1 %vm258_vm3, %v1060_v28  ;;  %v3435_v28 = vld [vmem:[%s3586_s6 + $0x2] ss:$0 sm:$0xff]  ;;  %s3046_s6 = smov 88  }
0x1554   :  { %v1130_v29 = vpop.f32.mrb[6].mxu1 }
0x1555   :  { %v1136_v30 = vadd.f32 %v1130_v29, %v3151_v60  ;;  %v1132_v33 = vpop.f32.mrb[7].mxu1 }
0x1556   :  { %v1135_v52 = vadd.f32 %v3258_v37, %v1132_v33 }
0x1557   :  { %2962 = vtanh.f32 %v1136_v30  ;;  %v2441_v36 = vmul.f32 -1.442695, %v1136_v30 }
0x1558   :  { %2964 = vtanh.f32 %v1135_v52  ;;  %v2440_v55 = vmul.f32 -1.442695, %v1135_v52 }
0x1559   :  { %2966 = vpow2.f32 %v2441_v36 }
0x155a   :  { %2968 = vpow2.f32 %v2440_v55 }
0x1561   :  { %v2963_v34 = vpop.eup %2962 }
0x1562   :  { %v2965_v35 = vpop.eup %2964  ;;  %1170 = vrot.lane.b32.xlu1 %v2963_v34, %s3042_s1 }
0x1563   :  { %1146 = vrot.lane.b32.xlu0 %v2965_v35, %s3042_s1  ;;  %v2967_v38 = vpop.eup %2966 }
0x1564   :  { %v2969_v39 = vpop.eup %2968  ;;  %v1164_v40 = vadd.f32 1.0, %v2967_v38 }
0x1565   :  { %v1140_v41 = vadd.f32 1.0, %v2969_v39 }
0x1566   :  { %2970 = vrcp.f32 %v1164_v40 }
0x1567   :  { %2972 = vrcp.f32 %v1140_v41 }
0x1570   :  { %v2971_v60 = vpop.eup %2970 }
0x1571   :  { %v2973_v11 = vpop.eup %2972  ;;  %v1168_v46 = vmul.f32 %v2971_v60, %v1045_v53  ;;  %v46_v53 = vld [vmem:[%s3584_s4] sm:$0xff] }
0x1572   :  { %v1144_v48 = vmul.f32 %v2973_v11, %v1021_v12  ;;  %v48_v12 = vld [vmem:[%s3584_s4 + $0x10] sm:$0xff] }
0x1573   :  { %v2745_v17 = vpack.c.bf16 %v49_v13, %v48_v12 }
0x15d4   :  { %v1171_v42 = vpop.permute.xlu1 %1170 }
0x15d5   :  { %v1173_v43 = vmul.f32 %v2971_v60, %v1171_v42  ;;  %v1147_v44 = vpop.permute.xlu0 %1146 }
0x15d6   :  { %v1149_v45 = vmul.f32 %v2973_v11, %v1147_v44 }
0x15d7   :  { %1175 = vrot.lane.b32.xlu1 %v1173_v43, %s3043_s15 }
0x15d8   :  { %1151 = vrot.lane.b32.xlu0 %v1149_v45, %s3043_s15 }
0x1649   :  { %v1176_v47 = vpop.permute.xlu1 %1175 }
0x164a   :  { %v1178_v49 = vadd.f32 %v1176_v47, %v1168_v46  ;;  %v1152_v50 = vpop.permute.xlu0 %1151 }
0x164b   :  { %v1154_v10 = vadd.f32 %v1152_v50, %v1144_v48 }
0x164c   :  { %2974 = vtanh.f32 %v1178_v49 }
0x164d   :  { %2976 = vtanh.f32 %v1154_v10 }
0x1656   :  { %v2975_v51 = vpop.eup %2974 }
0x1657   :  { %v2977_v54 = vpop.eup %2976  ;;  %1181 = vrot.lane.b32.xlu1 %v2975_v51, %s3042_s1 }
0x1658   :  { %1157 = vrot.lane.b32.xlu0 %v2977_v54, %s3042_s1 }
0x16c9   :  { %v1182_v57 = vpop.permute.xlu1 %1181 }
0x16ca   :  { %v1184_v61 = vmul.f32 %v2971_v60, %v1182_v57  ;;  %v1158_v62 = vpop.permute.xlu0 %1157  ;;  %v1403_v60 = vlaneseq }
0x16cb   :  { %v1160_v63 = vmul.f32 %v2973_v11, %v1158_v62 }
0x16cc   :  { %1186 = vrot.lane.b32.xlu0 %v1184_v61, %s3043_s15  ;;  %v1404_v42 = vshrl.u32 %v1403_v60, 7  ;;  %v1407_v43 = vand.u32 127, %v1403_v60 }
0x16cd   :  { %v1300_v14 = vrot.slane %v1160_v63, 4  ;;  %1190 = vrot.lane.b32.xlu1 %v1160_v63, %s3042_s1 }
0x16ce   :  { %v1405_v11 = vadd.s32 8, %v1404_v42  ;;  %v1436_v45 = vand.u32 1, %v1407_v43  ;;  %v1412_v46 = vand.u32 1, %v1404_v42 }
0x16cf   :  { %v1312_v15 = vsel %vm1307_vm5, %v1311_v32, %v1300_v14 }
0x16d0   :  { %v1419_v44 = vand.u32 1, %v1405_v11  ;;  %vm3464_vm10 = vcmp.eq.s32.totalorder %v1412_v46, %v1436_v45 }
0x16d2   :  { %vm3460_vm9 = vcmp.eq.s32.totalorder %v1419_v44, %v1436_v45 }
0x173e   :  { %v1187_v20 = vpop.permute.xlu0 %1186 }
0x173f   :  { %v1191_v21 = vpop.permute.xlu1 %1190 }
0x1740   :  { %v1193_v26 = vsel %vm256_vm2, %v1187_v20, %v1191_v21 }
0x1741   :  { %2442 = vmatmul.mubr.msk.f32.vlgmr.msra.gmra.mrb[8].mxu0 %vm258_vm3, %v1193_v26 }
0x1814   :  { %v1263_v27 = vpop.f32.mrb[8].mxu0 }
0x1815   :  { %v1264_v31 = vpop.f32.mrb[9].mxu0 }
0x1816   :  { %v1267_v0 = vadd.f32 %v3258_v37, %v1264_v31 }
0x1818   :  { %2978 = vtanh.f32 %v1267_v0  ;;  %v2443_v1 = vmul.f32 -1.442695, %v1267_v0 }
0x181a   :  { %2980 = vpow2.f32 %v2443_v1 }
0x1822   :  { %v2979_v59 = vpop.eup %2978 }
0x1823   :  { %1277 = vrot.lane.b32.xlu0 %v2979_v59, %s3042_s1 }
0x1824   :  { %v2981_v2 = vpop.eup %2980 }
0x1825   :  { %v1271_v56 = vadd.f32 1.0, %v2981_v2 }
0x1827   :  { %2982 = vrcp.f32 %v1271_v56 }
0x1831   :  { %v2983_v3 = vpop.eup %2982 }
0x1832   :  { %v1275_v7 = vmul.f32 %v2983_v3, %v1154_v10 }
0x1895   :  { %v1278_v4 = vpop.permute.xlu0 %1277 }
0x1896   :  { %v1280_v5 = vmul.f32 %v2983_v3, %v1278_v4 }
0x1898   :  { %1282 = vrot.lane.b32.xlu1 %v1280_v5, %s3043_s15 }
0x189c   :  { %1320 = vrot.lane.b32.xlu1 %v3348_v16, %s3043_s15  ;;  %v2741_v16 = vpack.c.bf16 %v47_v6, %v46_v53 }
0x189e   :  { %2742 = vmatprep.subr.bf16.mxu1 %v2741_v16 }
0x189f   :  { %2744 = vmatpush3.bf16.msra.mxu1 %v2741_v16 }
0x18a0   :  { %2746 = vmatprep.subr.bf16.mxu1 %v2745_v17 }
0x18a3   :  { %2748 = vmatpush3.bf16.msra.mxu1 %v2745_v17 }
0x190a   :  { %v1283_v8 = vpop.permute.xlu1 %1282 }
0x190b   :  { %v1285_v37 = vadd.f32 %v1283_v8, %v1275_v7 }
0x190d   :  { %2984 = vtanh.f32 %v1285_v37 }
0x190e   :  { %v1321_v9 = vpop.permute.xlu1 %1320 }
0x190f   :  { %2539 = vmatprep.mubr.msk.f32.mxu1 %vm256_vm2, %v1321_v9 }
0x1917   :  { %v2985_v18 = vpop.eup %2984 }
0x1918   :  { %1288 = vrot.lane.b32.xlu0 %v2985_v18, %s3042_s1 }
0x198a   :  { %v1289_v19 = vpop.permute.xlu0 %1288 }
0x198b   :  { %v1291_v22 = vmul.f32 %v2983_v3, %v1289_v19 }
0x198d   :  { %v1303_v23 = vrot.slane %v1291_v22, 2 }
0x198f   :  { %v1313_v24 = vsel %vm1309_vm6, %v1312_v15, %v1303_v23 }
0x1990   :  { %1322 = vrot.lane.b32.xlu0 %v1313_v24, %s3043_s15 }
0x1a02   :  { %v1323_v25 = vpop.permute.xlu0 %1322 }
0x1a03   :  { %2540 = vmatmul.mubr.msk.f32.vlgmr.msra.gmra.mrb[8].mxu1 %vm256_vm2, %v1323_v25 }
0x1ad6   :  { %v2541_v29 = vpop.f32.mrb[8].mxu1 }
0x1ad7   :  { %v1400_v30 = vadd.f32 %v2541_v29, %v3435_v28  ;;  %v1394_v33 = vpop.f32.mrb[9].mxu1 }
0x1ad8   :  { %v1395_v52 = vadd.f32 %v3435_v28, %v1394_v33 }
0x1ad9   :  { %v3456_v41 = vmul.f32 0.35355338, %v1400_v30 }
0x1ada   :  { %v3439_v34 = vpack.i.bf16 %v1400_v30, %v1395_v52  ;;  %v3441_v35 = vmul.f32 0.35355338, %v1395_v52 }
0x1adc   :  { %2815 = vrot.lane.b32.xlu1 %v3439_v34, %s3045_s10  ;;  %2546 = vmatprep.mubr.msk.f32.mxu0 %vm1454_vm7, %v3441_v35 }
0x1b4e   :  { %v2816_v36 = vpop.permute.xlu1 %2815 }
0x1b4f   :  { %v2818_v55 = vunpack.i.h.bf16 %v2816_v36  ;;  %v2817_v38 = vunpack.i.l.bf16 %v2816_v36 }
0x1b51   :  { %v2749_v40 = vpack.c.bf16 %v2818_v55, %v2817_v38 }
0x1b53   :  { %2751 = vmatprep.subr.msk.bf16.mxu0 %vm3448_vm8, %v2749_v40 }
0x1b54   :  { %2754 = vmatpush3.bf16.xpose.msk.msra.mxu0 %vm3448_vm8, %v2749_v40 }
0x1b5b   :  { %2547 = vmatmul.mubr.msk.f32.vlgmr.msra.gmra.mrb[10].mxu0 %vm1454_vm7, %v3456_v41 }
0x1c2e   :  { %v2548_v49 = vpop.f32.mrb[10].mxu0 }
0x1c2f   :  { %v1541_v50 = vsel %vm3460_vm9, %v2548_v49, -1e+30  ;;  %v1531_v10 = vpop.f32.mrb[11].mxu0 }
0x1c30   :  { %v1540_v51 = vsel %vm3464_vm10, %v1531_v10, -1e+30  ;;  %v1546_v54 = vsel %vm1542_vm11, %v1541_v50, -inf }
0x1c31   :  { %1547 = vmax.xlane.f32.xlu1 %v1546_v54  ;;  %v1543_v57 = vsel %vm1542_vm11, %v1540_v51, -inf }
0x1c32   :  { %1544 = vmax.xlane.f32.xlu0 %v1543_v57 }
0x1c42   :  { %2825 = vrot.lane.b32.xlu1 %v3439_v34, %s3046_s6 }
0x1c46   :  { %1652 = vrot.lane.b32.xlu1 %v3441_v35, %s3047_s11 }
0x1c4a   :  { %2830 = vrot.lane.b32.xlu1 %v3439_v34, %s3048_s2 }
0x1c4e   :  { %1854 = vrot.lane.b32.xlu1 %v3441_v35, %s3049_s12 }
0x1cbe   :  { %v1548_v58 = vpop.xlane.xlu1 %1547 }
0x1cbf   :  { %v1550_v61 = vsub.f32 %v1541_v50, %v1548_v58  ;;  %v1545_v62 = vpop.xlane.xlu0 %1544 }
0x1cc0   :  { %v1549_v63 = vsub.f32 %v1540_v51, %v1545_v62 }
0x1cc1   :  { %v1553_v14 = vmul.f32 1.442695, %v1550_v61 }
0x1cc2   :  { %v1551_v32 = vmul.f32 1.442695, %v1549_v63  ;;  %v2826_v15 = vpop.permute.xlu1 %2825 }
0x1cc3   :  { %2986 = vpow2.f32 %v1553_v14  ;;  %v2828_v7 = vunpack.i.h.bf16 %v2826_v15  ;;  %v2827_v8 = vunpack.i.l.bf16 %v2826_v15 }
0x1cc4   :  { %2988 = vpow2.f32 %v1551_v32 }
0x1cc5   :  { %v2759_v12 = vpack.c.bf16 %v2828_v7, %v2827_v8 }
0x1cc6   :  { %v1653_v20 = vpop.permute.xlu1 %1652 }
0x1cca   :  { %v2831_v21 = vpop.permute.xlu1 %2830 }
0x1ccb   :  { %v2833_v26 = vunpack.i.h.bf16 %v2831_v21  ;;  %v2832_v27 = vunpack.i.l.bf16 %v2831_v21 }
0x1ccd   :  { %v2987_v31 = vpop.eup %2986  ;;  %v2769_v0 = vpack.c.bf16 %v2833_v26, %v2832_v27 }
0x1cce   :  { %v1855_v59 = vpop.permute.xlu1 %1854  ;;  %v1558_v1 = vsel %vm1542_vm11, %v2987_v31, 0.0  ;;  %v2989_v2 = vpop.eup %2988 }
0x1ccf   :  { %2771 = vmatprep.subr.msk.bf16.mxu0 %vm3448_vm8, %v2769_v0  ;;  %2574 = vmatprep.mubr.msk.f32.mxu0 %vm1454_vm7, %v1855_v59  ;;  %v1555_v56 = vsel %vm1542_vm11, %v2989_v2, 0.0 }
0x1cd0   :  { %1559 = vadd.xlane.f32.xlu0 %v1558_v1  ;;  %2774 = vmatpush3.bf16.xpose.msk.msra.mxu0 %vm3448_vm8, %v2769_v0 }
0x1cd4   :  { %1556 = vadd.xlane.f32.xlu0 %v1555_v56 }
0x1cea   :  { %2820 = vrot.lane.b32.xlu0 %v3439_v34, %s3042_s1  ;;  %s3050_s1 = smov 56  }
0x1cee   :  { %1654 = vrot.lane.b32.xlu0 %v3456_v41, %s3047_s11 }
0x1cf2   :  { %1856 = vrot.lane.b32.xlu0 %v3456_v41, %s3049_s12 }
0x1d5d   :  { %v1560_v3 = vpop.xlane.xlu0 %1559 }
0x1d5e   :  { %2990 = vrcp.f32 %v1560_v3 }
0x1d61   :  { %v1557_v4 = vpop.xlane.xlu0 %1556 }
0x1d62   :  { %2992 = vrcp.f32 %v1557_v4 }
0x1d65   :  { %v2821_v5 = vpop.permute.xlu0 %2820 }
0x1d66   :  { %v2823_v37 = vunpack.i.h.bf16 %v2821_v5  ;;  %v2822_v9 = vunpack.i.l.bf16 %v2821_v5 }
0x1d68   :  { %v2755_v53 = vpack.c.bf16 %v2823_v37, %v2822_v9  ;;  %v2991_v16 = vpop.eup %2990 }
0x1d69   :  { %v1655_v6 = vpop.permute.xlu0 %1654  ;;  %v1564_v19 = vmul.f32 %v2991_v16, %v2987_v31 }
0x1d6a   :  { %2756 = vmatprep.subr.bf16.mxu1 %v2755_v53 }
0x1d6b   :  { %2758 = vmatpush3.bf16.msra.mxu1 %v2755_v53 }
0x1d6c   :  { %v2993_v13 = vpop.eup %2992  ;;  %2761 = vmatprep.subr.msk.bf16.mxu1 %vm3448_vm8, %v2759_v12 }
0x1d6d   :  { %v1857_v17 = vpop.permute.xlu0 %1856  ;;  %v1563_v18 = vmul.f32 %v2993_v13, %v2989_v2 }
0x1d6e   :  { %2575 = vmatmul.mubr.msk.f32.vlgmr.msra.gmra.mrb[12].mxu0 %vm1454_vm7, %v1857_v17 }
0x1d6f   :  { %2553 = vmatprep.mubr.msk.f32.mxu1 %vm1542_vm11, %v1563_v18 }
0x1d70   :  { %2554 = vmatmul.mubr.msk.f32.vlgmr.msra.gmra.mrb[10].mxu1 %vm1542_vm11, %v1564_v19 }
0x1d71   :  { %2560 = vmatprep.mubr.msk.f32.mxu1 %vm1454_vm7, %v1653_v20 }
0x1d74   :  { %2764 = vmatpush3.bf16.xpose.msk.msra.mxu1 %vm3448_vm8, %v2759_v12 }
0x1d7b   :  { %2561 = vmatmul.mubr.msk.f32.vlgmr.msra.gmra.mrb[12].mxu1 %vm1454_vm7, %v1655_v6 }
0x1e41   :  { %v2576_v22 = vpop.f32.mrb[12].mxu0 }
0x1e42   :  { %v1936_v23 = vpop.f32.mrb[13].mxu0  ;;  %v1946_v60 = vsel %vm3460_vm9, %v2576_v22, -1e+30 }
0x1e43   :  { %v3500_v24 = vpop.f32.mrb[10].mxu1  ;;  %v1945_v55 = vsel %vm3464_vm10, %v1936_v23, -1e+30  ;;  %v1950_v42 = vsel %vm1542_vm11, %v1946_v60, -inf }
0x1e44   :  { %v3502_v25 = vpop.f32.mrb[11].mxu1  ;;  %v1947_v40 = vsel %vm1542_vm11, %v1945_v55, -inf }
0x1e4e   :  { %v2562_v29 = vpop.f32.mrb[12].mxu1 }
0x1e4f   :  { %v1744_v30 = vsel %vm3460_vm9, %v2562_v29, -1e+30  ;;  %v1734_v33 = vpop.f32.mrb[13].mxu1 }
0x1e50   :  { %v1743_v52 = vsel %vm3464_vm10, %v1734_v33, -1e+30  ;;  %v1748_v36 = vsel %vm1542_vm11, %v1744_v30, -inf }
0x1e51   :  { %1749 = vmax.xlane.f32.xlu0 %v1748_v36  ;;  %v1745_v38 = vsel %vm1542_vm11, %v1743_v52, -inf }
0x1e52   :  { %1746 = vmax.xlane.f32.xlu1 %v1745_v38 }
0x1e55   :  { %1948 = vmax.xlane.f32.xlu0 %v1947_v40 }
0x1e59   :  { %1951 = vmax.xlane.f32.xlu0 %v1950_v42 }
0x1ede   :  { %v1750_v11 = vpop.xlane.xlu0 %1749 }
0x1edf   :  { %v1752_v45 = vsub.f32 %v1744_v30, %v1750_v11  ;;  %v1747_v14 = vpop.xlane.xlu1 %1746 }
0x1ee0   :  { %v1751_v32 = vsub.f32 %v1743_v52, %v1747_v14 }
0x1ee1   :  { %v1755_v10 = vmul.f32 1.442695, %v1752_v45 }
0x1ee2   :  { %v1949_v43 = vpop.xlane.xlu0 %1948  ;;  %v1753_v15 = vmul.f32 1.442695, %v1751_v32  ;;  %v51_v32 = vld [vmem:[%s3585_s5 + $0x8] sm:$0xff] }
0x1ee3   :  { %v1953_v44 = vsub.f32 %v1945_v55, %v1949_v43 }
0x1ee5   :  { %v1955_v46 = vmul.f32 1.442695, %v1953_v44 }
0x1ee6   :  { %v1952_v49 = vpop.xlane.xlu0 %1951 }
0x1ee7   :  { %2994 = vpow2.f32 %v1955_v46  ;;  %v1954_v50 = vsub.f32 %v1946_v60, %v1952_v49 }
0x1ee9   :  { %v1957_v51 = vmul.f32 1.442695, %v1954_v50 }
0x1eeb   :  { %2996 = vpow2.f32 %v1957_v51 }
0x1eec   :  { %2998 = vpow2.f32 %v1755_v10 }
0x1eed   :  { %3000 = vpow2.f32 %v1753_v15  ;;  %v52_v15 = vld [vmem:[%s3585_s5 + $0x10] sm:$0xff] }
0x1ef1   :  { %v2995_v54 = vpop.eup %2994 }
0x1ef2   :  { %v1959_v57 = vsel %vm1542_vm11, %v2995_v54, 0.0 }
0x1ef3   :  { %1960 = vadd.xlane.f32.xlu1 %v1959_v57 }
0x1ef5   :  { %v2997_v58 = vpop.eup %2996 }
0x1ef6   :  { %v1962_v61 = vsel %vm1542_vm11, %v2997_v58, 0.0  ;;  %v2999_v62 = vpop.eup %2998 }
0x1ef7   :  { %1963 = vadd.xlane.f32.xlu0 %v1962_v61  ;;  %v1760_v63 = vsel %vm1542_vm11, %v2999_v62, 0.0  ;;  %v3001_v20 = vpop.eup %3000 }
0x1ef8   :  { %v1757_v21 = vsel %vm1542_vm11, %v3001_v20, 0.0 }
0x1efb   :  { %1761 = vadd.xlane.f32.xlu0 %v1760_v63 }
0x1f04   :  { %2835 = vrot.lane.b32.xlu1 %v3439_v34, %s3050_s1 }
0x1f11   :  { %2840 = vrot.lane.b32.xlu0 %v3439_v34, %s3051_s13 }
0x1f28   :  { %1758 = vadd.xlane.f32.xlu1 %v1757_v21  ;;  %v53_v21 = vld [vmem:[%s3585_s5 + $0x18] sm:$0xff] }
0x1f39   :  { %2845 = vrot.lane.b32.xlu1 %v3439_v34, %s3052_s14 }
0x1f3d   :  { %2056 = vrot.lane.b32.xlu1 %v3441_v35, %s3053_s16 }
0x1f41   :  { %2058 = vrot.lane.b32.xlu1 %v3456_v41, %s3053_s16 }
0x1f80   :  { %v1961_v26 = vpop.xlane.xlu1 %1960 }
0x1f81   :  { %3002 = vrcp.f32 %v1961_v26  ;;  %v2793_v26 = vpack.c.bf16 %v53_v21, %v52_v15 }
0x1f84   :  { %v1964_v27 = vpop.xlane.xlu0 %1963  ;;  %v2836_v31 = vpop.permute.xlu1 %2835 }
0x1f85   :  { %v2838_v0 = vunpack.i.h.bf16 %v2836_v31  ;;  %v2837_v59 = vunpack.i.l.bf16 %v2836_v31 }
0x1f87   :  { %v2765_v1 = vpack.c.bf16 %v2838_v0, %v2837_v59 }
0x1f88   :  { %v1762_v2 = vpop.xlane.xlu0 %1761 }
0x1f89   :  { %2766 = vmatprep.subr.bf16.mxu1 %v2765_v1  ;;  %3004 = vrcp.f32 %v1762_v2 }
0x1f8a   :  { %2768 = vmatpush3.bf16.msra.mxu1 %v2765_v1 }
0x1f8b   :  { %v3003_v41 = vpop.eup %3002 }
0x1f8c   :  { %v2841_v56 = vpop.permute.xlu0 %2840  ;;  %v1967_v13 = vmul.f32 %v3003_v41, %v2995_v54 }
0x1f8d   :  { %v2843_v3 = vunpack.i.h.bf16 %v2841_v56  ;;  %v2842_v4 = vunpack.i.l.bf16 %v2841_v56 }
0x1f8f   :  { %v2775_v5 = vpack.c.bf16 %v2843_v3, %v2842_v4 }
0x1f91   :  { %2776 = vmatprep.subr.bf16.mxu1 %v2775_v5 }
0x1f93   :  { %v3005_v8 = vpop.eup %3004 }
0x1f94   :  { %v1766_v12 = vmul.f32 %v3005_v8, %v2999_v62 }
0x1fb5   :  { %v1759_v7 = vpop.xlane.xlu1 %1758 }
0x1fb6   :  { %3006 = vrcp.f32 %v1759_v7 }
0x1fb7   :  { %3008 = vrcp.f32 %v1964_v27 }
0x1fb9   :  { %v2846_v35 = vpop.permute.xlu1 %2845 }
0x1fba   :  { %v2848_v9 = vunpack.i.h.bf16 %v2846_v35  ;;  %v2847_v53 = vunpack.i.l.bf16 %v2846_v35 }
0x1fbc   :  { %v2779_v17 = vpack.c.bf16 %v2848_v9, %v2847_v53 }
0x1fbd   :  { %v2057_v19 = vpop.permute.xlu1 %2056 }
0x1fc0   :  { %v3007_v37 = vpop.eup %3006 }
0x1fc1   :  { %v1765_v6 = vmul.f32 %v3007_v37, %v3001_v20  ;;  %v3009_v16 = vpop.eup %3008  ;;  %v2059_v22 = vpop.permute.xlu1 %2058 }
0x1fc2   :  { %v1968_v18 = vmul.f32 %v3009_v16, %v2997_v58 }
0x1fc3   :  { %2567 = vmatprep.mubr.msk.f32.mxu1 %vm1542_vm11, %v1765_v6 }
0x1fc4   :  { %2568 = vmatmul.mubr.msk.f32.vlgmr.msra.gmra.mrb[14].mxu1 %vm1542_vm11, %v1766_v12 }
0x1fc5   :  { %2778 = vmatpush3.bf16.msra.mxu1 %v2775_v5  ;;  %2581 = vmatprep.mubr.msk.f32.mxu1 %vm1542_vm11, %v1967_v13 }
0x1fc6   :  { %2781 = vmatprep.subr.msk.bf16.mxu1 %vm3448_vm8, %v2779_v17 }
0x1fc8   :  { %2582 = vmatmul.mubr.msk.f32.vlgmr.msra.gmra.mrb[16].mxu1 %vm1542_vm11, %v1968_v18 }
0x1fc9   :  { %2588 = vmatprep.mubr.msk.f32.mxu1 %vm1454_vm7, %v2057_v19 }
0x1fce   :  { %2784 = vmatpush3.bf16.xpose.msk.msra.mxu1 %vm3448_vm8, %v2779_v17 }
0x1fd5   :  { %2589 = vmatmul.mubr.msk.f32.vlgmr.msra.gmra.mrb[18].mxu1 %vm1454_vm7, %v2059_v22 }
0x2097   :  { %v2569_v23 = vpop.f32.mrb[14].mxu1 }
0x2098   :  { %v1845_v29 = vpop.f32.mrb[15].mxu1 }
0x209b   :  { %v2583_v30 = vpop.f32.mrb[16].mxu1 }
0x209c   :  { %v2047_v33 = vpop.f32.mrb[17].mxu1 }
0x20a8   :  { %v2590_v52 = vpop.f32.mrb[18].mxu1 }
0x20a9   :  { %v2148_v36 = vsel %vm3460_vm9, %v2590_v52, -1e+30  ;;  %v2138_v55 = vpop.f32.mrb[19].mxu1 }
0x20aa   :  { %v2147_v38 = vsel %vm3464_vm10, %v2138_v55, -1e+30  ;;  %v2152_v40 = vsel %vm1542_vm11, %v2148_v36, -inf }
0x20ab   :  { %2153 = vmax.xlane.f32.xlu1 %v2152_v40  ;;  %v2149_v39 = vsel %vm1542_vm11, %v2147_v38, -inf }
0x20ac   :  { %2150 = vmax.xlane.f32.xlu0 %v2149_v39 }
0x20bc   :  { %2260 = vrot.lane.b32.xlu1 %v1845_v29, %s3054_s17 }
0x20c0   :  { %2262 = vrot.lane.b32.xlu1 %v2569_v23, %s3054_s17 }
0x20c4   :  { %2268 = vrot.lane.b32.xlu1 %v2047_v33, %s3055_s18 }
0x2138   :  { %v2154_v60 = vpop.xlane.xlu1 %2153 }
0x2139   :  { %v2156_v42 = vsub.f32 %v2148_v36, %v2154_v60  ;;  %v2151_v11 = vpop.xlane.xlu0 %2150 }
0x213a   :  { %v2155_v47 = vsub.f32 %v2147_v38, %v2151_v11 }
0x213b   :  { %v2159_v43 = vmul.f32 1.442695, %v2156_v42 }
0x213c   :  { %v2157_v44 = vmul.f32 1.442695, %v2155_v47  ;;  %v2261_v0 = vpop.permute.xlu1 %2260 }
0x213d   :  { %3010 = vpow2.f32 %v2159_v43  ;;  %v2282_v56 = vsel %vm1454_vm7, %v3502_v25, %v2261_v0 }
0x213e   :  { %3012 = vpow2.f32 %v2157_v44 }
0x2140   :  { %v2263_v59 = vpop.permute.xlu1 %2262 }
0x2141   :  { %v2283_v4 = vsel %vm1454_vm7, %v3500_v24, %v2263_v59 }
0x2144   :  { %v2269_v2 = vpop.permute.xlu1 %2268 }
0x2145   :  { %v2284_v5 = vsel %vm1542_vm11, %v2282_v56, %v2269_v2 }
0x2147   :  { %v3011_v48 = vpop.eup %3010 }
0x2148   :  { %v2164_v45 = vsel %vm1542_vm11, %v3011_v48, 0.0  ;;  %v3013_v46 = vpop.eup %3012 }
0x2149   :  { %2165 = vadd.xlane.f32.xlu0 %v2164_v45  ;;  %v2161_v49 = vsel %vm1542_vm11, %v3013_v46, 0.0 }
0x214d   :  { %2162 = vadd.xlane.f32.xlu0 %v2161_v49 }
0x2163   :  { %2850 = vrot.lane.b32.xlu0 %v3439_v34, %s3056_s19  ;;  %v50_v34 = vld [vmem:[%s3585_s5] sm:$0xff]  ;;  %s3058_s5 = smov [#allocation2]  }
0x2164   :  { %v2789_v20 = vpack.c.bf16 %v51_v32, %v50_v34 }
0x2167   :  { %2270 = vrot.lane.b32.xlu0 %v2583_v30, %s3055_s18 }
0x21d6   :  { %v2166_v50 = vpop.xlane.xlu0 %2165 }
0x21d7   :  { %3014 = vrcp.f32 %v2166_v50 }
0x21da   :  { %v2163_v10 = vpop.xlane.xlu0 %2162 }
0x21db   :  { %3016 = vrcp.f32 %v2163_v10 }
0x21de   :  { %v2851_v51 = vpop.permute.xlu0 %2850 }
0x21df   :  { %v2853_v54 = vunpack.i.h.bf16 %v2851_v51  ;;  %v2852_v57 = vunpack.i.l.bf16 %v2851_v51 }
0x21e1   :  { %v2785_v58 = vpack.c.bf16 %v2853_v54, %v2852_v57  ;;  %v3015_v61 = vpop.eup %3014 }
0x21e2   :  { %v2170_v14 = vmul.f32 %v3015_v61, %v3011_v48  ;;  %v2271_v1 = vpop.permute.xlu0 %2270 }
0x21e3   :  { %2786 = vmatprep.subr.bf16.mxu0 %v2785_v58  ;;  %v2285_v35 = vsel %vm1542_vm11, %v2283_v4, %v2271_v1 }
0x21e4   :  { %2788 = vmatpush3.bf16.msra.mxu0 %v2785_v58 }
0x21e5   :  { %v3017_v62 = vpop.eup %3016  ;;  %2790 = vmatprep.subr.bf16.mxu0 %v2789_v20 }
0x21e6   :  { %v2169_v63 = vmul.f32 %v3017_v62, %v3013_v46 }
0x21e8   :  { %2595 = vmatprep.mubr.msk.f32.mxu0 %vm1542_vm11, %v2169_v63 }
0x21e9   :  { %2596 = vmatmul.mubr.msk.f32.vlgmr.msra.gmra.mrb[14].mxu0 %vm1542_vm11, %v2170_v14 }
0x21ea   :  { %2792 = vmatpush3.bf16.msra.mxu0 %v2789_v20 }
0x21eb   :  { %2794 = vmatprep.subr.bf16.mxu0 %v2793_v26 }
0x21ee   :  { %2796 = vmatpush3.bf16.msra.mxu0 %v2793_v26 }
0x22bc   :  { %v2597_v27 = vpop.f32.mrb[14].mxu0 }
0x22bd   :  { %2278 = vrot.lane.b32.xlu0 %v2597_v27, %s3057_s27  ;;  %v2249_v31 = vpop.f32.mrb[15].mxu0 }
0x22be   :  { %2276 = vrot.lane.b32.xlu1 %v2249_v31, %s3057_s27 }
0x22c2   :  { %2290 = vrot.lane.b32.xlu1 %v3435_v28, %s3043_s15  ;;  %s2405_s15 = sshll.u32 %s3058_s5, 4  ;;  %s2406_s15 = int_to_ptr.vmem [resolvable:$true] %s2405_s15 }
0x22c3   :  { %s3018_s0 = scalar_lea.vmem %s2406_s15, 32  ;;  %p3023_p1 = scmp.lt.s32.totalorder %s2406_s15, %s2406_s15 }
0x22c4   :  { %p3019_p0 = scmp.ne.s32.totalorder %s2406_s15, %s3018_s0  ;;  %p3024_p2 = scmp.lt.s32.totalorder %s3018_s0, %s3018_s0 }
0x22c6   :  { %p3025_p3 = por %p3024_p2, %p3023_p1 }
0x22c8   :  { %p3026_p4 = pnand %p3025_p3, %p3019_p0 }
0x232f   :  { %v2279_v3 = vpop.permute.xlu0 %2278 }
0x2330   :  { %v2277_v7 = vpop.permute.xlu1 %2276  ;;  %v2288_v8 = vsel %vm2286_vm12, %v2285_v35, %v2279_v3 }
0x2331   :  { %v2287_v41 = vsel %vm2286_vm12, %v2284_v5, %v2277_v7 }
0x2332   :  { %2606 = vmatprep.mubr.msk.f32.mxu0 %vm256_vm2, %v2287_v41 }
0x2333   :  { %2607 = vmatmul.mubr.msk.f32.vlgmr.msra.gmra.mrb[16].mxu0 %vm256_vm2, %v2288_v8 }
0x2334   :  { %v2291_v28 = vpop.permute.xlu1 %2290 }
0x2406   :  { %v2608_v37 = vpop.f32.mrb[16].mxu0 }
0x2407   :  { %v2365_v9 = vpop.f32.mrb[17].mxu0  ;;  %v2371_v16 = vadd.f32 %v2608_v37, %v2291_v28 }
0x2408   :  { %v2366_v53 = vadd.f32 %v2365_v9, %v2291_v28 }
0x2409   :  { %v2387_v18 = vrot.slane %v2371_v16, 2  ;;  %v2390_v23 = vrot.slane %v2371_v16, 4  ;;  %v2393_v30 = vrot.slane %v2371_v16, 6 }
0x240a   :  { %v2376_v25 = vrot.slane %v2366_v53, 2  ;;  %v2379_v12 = vrot.slane %v2366_v53, 4  ;;  %v2382_v13 = vrot.slane %v2366_v53, 6 }
0x240c   :  { %v2378_v6 = vadd.f32 %v2376_v25, %v2366_v53 }
0x240e   :  { %v2381_v24 = vadd.f32 %v2379_v12, %v2378_v6 }
0x2410   :  { %v2384_v17 = vadd.f32 %v2382_v13, %v2381_v24 }
0x2412   :  { %v2385_v19 = vadd.f32 %v2384_v17, %v2371_v16 }
0x2414   :  { %v2389_v22 = vadd.f32 %v2387_v18, %v2385_v19 }
0x2416   :  { %v2392_v29 = vadd.f32 %v2390_v23, %v2389_v22 }
0x2418   :  { %v2395_v33 = vadd.f32 %v2393_v30, %v2392_v29 }
0x241a   :  { %v2396_v52 = vmul.f32 0.125, %v2395_v33 }
0x241c   :  { %2398 = vst.msk [vmem:[#allocation2] sm:$0x3] %vm2397_vm13, %v2396_v52 }
0x241d   :  { %3029 = shalt.err (!%p3026_p4)
}
0x241e   :  { %s3030_s30 = scalar_lea.hbm %s3587_s7, 32 }
0x241f   :  { %p3031_p5 = scmp.ne.s32.totalorder %s3587_s7, %s3030_s30  ;;  %p3034_p6 = scmp.lt.u32.totalorder %s3030_s30, %s3587_s7 }
0x2421   :  { %p3036_p7 = pnand %p3034_p6, %p3031_p5 }
0x2423   :  { %3039 = shalt.err (!%p3036_p7)
}
0x2424   :  { %2408 = dma.vmem_to_hbm [thread:$0]  %s2406_s15, 32, %s3587_s7, [#allocation3]  }
0x2425   :  { %3040 = dma.done.wait [#allocation3], 32  }
0x2426   :  { %3041 = vsyncadd [#allocation3], 4294967264 }
0x2427   :  { %2412 = vsyncpa [#allocation3], 1 }

</bundles_post_ra>
